<compile_context>
chip_gen: v7x
topology: tpu7x:2x2x1
jax: 0.10.0
libtpu: 0.0.40
codegen_flags: <defaults>
</compile_context>

<pallas_src>
import jax
import jax.numpy as jnp
from jax import lax
from jax.experimental import pallas as pl
from jax.experimental.pallas import tpu as pltpu


def _round_up(x, m):
    return ((x + m - 1) // m) * m


def _conv_silu_linear_kernel(xm_ref, xh_ref, w_ref, cb_ref, lw_ref, lb_ref,
                             out_ref, y_ref):
    """Per-tile fused Conv1d(K taps) + SiLU + Linear(64 -> 1).

    Shapes (64 real channels zero-padded to CP = 128 lanes per tap group):
      xm_ref : (TL, H)          bf16  main x rows for this tile
      xh_ref : (HALO, H)        bf16  first HALO rows of the next tile (halo)
      w_ref  : (H, K*CP)        bf16  conv weight, tap groups along columns
      cb_ref : (1, CP)          f32   conv bias (zero-padded)
      lw_ref : (8, CP)          f32   linear weight in row 0, zero-padded
      lb_ref : (1, 1)           f32   linear bias
      out_ref: (1, 1, TL)       f32   lane-dense per-tile logits
      y_ref  : (TL+HALO, K*CP)  f32   VMEM scratch for the wide matmul result
    """
    TL = xm_ref.shape[0]
    HALO = xh_ref.shape[0]
    CP = cb_ref.shape[1]
    K = w_ref.shape[1] // CP

    # One wide conv matmul (all K taps at once), bf16 in / f32 acc on the MXU,
    # written straight into the scratch (no concatenate copy).
    y_ref[0:TL, :] = jnp.dot(xm_ref[...], w_ref[...],
                             preferred_element_type=jnp.float32)
    if K > 1:
        # Halo rows only ever feed taps k >= 1, so skip the tap-0 columns.
        y_ref[TL:TL + HALO, CP:K * CP] = jnp.dot(
            xh_ref[...], w_ref[:, CP:K * CP],
            preferred_element_type=jnp.float32)

    # Combine tap groups: every slice below is lane-aligned (CP = 128 columns);
    # the k-row offset is a cheap sublane shift handled by Mosaic.
    acc = cb_ref[...] + y_ref[0:TL, 0:CP]
    for k in range(1, K):                                  # K is small & static
        acc = acc + y_ref[k:k + TL, k * CP:(k + 1) * CP]

    # SiLU in f32 (EUP sigmoid).  Padded channels stay exactly zero.
    act = acc * jax.nn.sigmoid(acc)

    # Linear(64 -> 1), fused and produced directly in lane-dense (1, TL) layout:
    # (8, CP) x (TL, CP)^T -> (8, TL); only row 0 carries real weights.
    y8 = lax.dot_general(lw_ref[...], act, (((1,), (1,)), ((), ())),
                         preferred_element_type=jnp.float32)
    y = y8[0:1, :] + lb_ref[...]                           # (1, TL)
    out_ref[...] = y.reshape(1, 1, TL).astype(out_ref.dtype)


def conv_forward(x, conv_w, conv_b, lin_w, lin_b, *, max_tile=2048):
    """x: (1, S, H); conv_w: (64, H, K); conv_b: (64,); lin_w: (1, 64); lin_b: (1,).
    Returns (1, S - K + 1) float32 logits matching the PyTorch module forward."""
    assert x.ndim == 3 and x.shape[0] == 1, x.shape
    _, S, H = x.shape
    C_out, C_in, K = conv_w.shape
    assert C_in == H and S >= K
    L = S - K + 1

    CP = 128                                   # lane-padded channels per tap group
    assert C_out <= CP, C_out

    # Halo: power-of-two multiple of 8 covering the K-1 boundary rows, so it
    # always divides the (128-aligned) tile length (robust for any K).
    HALO = 8
    while HALO < K - 1:
        HALO *= 2
    TL_ALIGN = max(128, HALO)

    # ---- per-generation VMEM budget -------------------------------------
    try:
        vmem_physical = pltpu.get_tpu_info().vmem_capacity_bytes
    except Exception:                          # not on TPU / older API
        vmem_physical = 64 * 1024 * 1024       # v7x per-TC physical (smallest)
    vmem_limit = min(int(vmem_physical * 0.75), 100 * 1024 * 1024)
    budget = int(vmem_limit * 0.85)            # leave compiler headroom

    # ---- tile-length selection -------------------------------------------
    # Target MB-scale per-step x DMAs so small-H models don't drown in the
    # ~0.35 us/step pipeline overhead; clamp by max_tile, L and the VMEM budget.
    x_target_bytes = 4 * 1024 * 1024
    TL = _round_up(max(x_target_bytes // (2 * H), 1), TL_ALIGN)
    TL = min(TL, _round_up(max_tile, TL_ALIGN))
    TL = min(TL, _round_up(L, TL_ALIGN))
    TL = max(TL, TL_ALIGN)

    def _vmem_bytes(tl):
        return (2 * tl * H * 2                   # x main, bf16, double-buffered
                + 2 * HALO * H * 2               # x halo
                + H * K * CP * 2                 # conv weight (single-buffered)
                + (tl + HALO) * K * CP * 4       # wide matmul scratch
                + 4 * tl * CP * 4                # acc/act temporaries
                + 2 * tl * 4                     # output block
                + (8 * CP + CP + 1) * 4)         # small params

    while TL > TL_ALIGN and _vmem_bytes(TL) > budget:
        TL -= TL_ALIGN

    # Keep >= 2 tiles whenever possible so both v7x TensorCores get work.
    if L > TL_ALIGN:
        TL = min(TL, _round_up(pl.cdiv(L, 2), TL_ALIGN))
    TL = max(TL, TL_ALIGN)

    num_tiles = pl.cdiv(L, TL)
    S_pad = num_tiles * TL + HALO

    # ---- wrapper-side layout plumbing (plain JAX glue) ---------------------
    xs = jnp.pad(x[0], ((0, S_pad - S), (0, 0))).astype(jnp.bfloat16)   # (S_pad, H)
    # conv weight (C, H, K) -> (H, K*CP): group k columns [k*CP, k*CP + C) hold
    # W_k = conv_w[:, :, k].T; the remaining CP - C columns are zero so the
    # tap-combine slices in the kernel stay full-vreg lane-aligned.
    w_hkc = jnp.transpose(conv_w, (1, 2, 0))                            # (H, K, C)
    w_hkc = jnp.pad(w_hkc, ((0, 0), (0, 0), (0, CP - C_out)))
    wcat = w_hkc.reshape(H, K * CP).astype(jnp.bfloat16)
    cb = jnp.pad(conv_b.reshape(1, C_out),
                 ((0, 0), (0, CP - C_out))).astype(jnp.float32)         # (1, CP)
    lw8 = jnp.pad(lin_w.astype(jnp.float32), ((0, 7), (0, CP - C_out)))  # (8, CP)
    lb = lin_b.reshape(1, 1).astype(jnp.float32)

    cost = pl.CostEstimate(
        flops=2 * L * H * K * C_out + 2 * L * C_out,
        transcendentals=L * C_out,
        bytes_accessed=S * H * 2 + H * K * C_out * 2 + L * 4,
    )

    def _build_and_call(single_buffer_weights):
        inv = {"pipeline_mode": pl.Buffered(1)} if single_buffer_weights else {}
        grid_spec = pltpu.PrefetchScalarGridSpec(
            num_scalar_prefetch=0,
            grid=(num_tiles,),
            in_specs=[
                pl.BlockSpec((TL, H), lambda i: (i, 0)),                         # x main
                pl.BlockSpec((HALO, H), lambda i: ((i + 1) * (TL // HALO), 0)),  # x halo
                pl.BlockSpec((H, K * CP), lambda i: (0, 0), **inv),              # conv w
                pl.BlockSpec((1, CP), lambda i: (0, 0), **inv),                  # conv b
                pl.BlockSpec((8, CP), lambda i: (0, 0), **inv),                  # linear w
                pl.BlockSpec((1, 1), lambda i: (0, 0), **inv),                   # linear b
            ],
            out_specs=pl.BlockSpec((1, 1, TL), lambda i: (i, 0, 0)),
            scratch_shapes=[pltpu.VMEM((TL + HALO, K * CP), jnp.float32)],
        )
        return pl.pallas_call(
            _conv_silu_linear_kernel,
            out_shape=jax.ShapeDtypeStruct((num_tiles, 1, TL), jnp.float32),
            grid_spec=grid_spec,
            compiler_params=pltpu.CompilerParams(
                dimension_semantics=("parallel",),      # v7x: 2 TCs split tiles
                vmem_limit_bytes=vmem_limit),
            cost_estimate=cost,
        )(xs, xs, wcat, cb, lw8, lb)

    try:
        out = _build_and_call(True)
    except Exception:
        # Fallback if this JAX version rejects Buffered(1) single-buffering of
        # grid-invariant operands; costs one extra weight copy of VMEM only.
        out = _build_and_call(False)

    return out.reshape(-1)[:L].reshape(1, L)


def _xavier_uniform(key, shape, fan_in, fan_out, dtype=jnp.float32):
    bound = (6.0 / (fan_in + fan_out)) ** 0.5
    return jax.random.uniform(key, shape, dtype, minval=-bound, maxval=bound)


def init_params(key, hidden_size, kernel_size, out_channels=64):
    k1, k2 = jax.random.split(key)
    conv_w = _xavier_uniform(
        k1, (out_channels, hidden_size, kernel_size),
        fan_in=hidden_size * kernel_size, fan_out=out_channels * kernel_size)
    conv_b = jnp.zeros((out_channels,), jnp.float32)
    lin_w = _xavier_uniform(k2, (1, out_channels), fan_in=out_channels, fan_out=1)
    lin_b = jnp.full((1,), -1.0, jnp.float32)
    return conv_w, conv_b, lin_w, lin_b


def _reference(x, conv_w, conv_b, lin_w, lin_b):
    """Pure-JAX forward mirroring the kernel's bf16 input/weight rounding."""
    _, S, H = x.shape
    C_out, _, K = conv_w.shape
    L = S - K + 1
    xs = x[0].astype(jnp.bfloat16).astype(jnp.float32)
    w = conv_w.astype(jnp.bfloat16).astype(jnp.float32)
    acc = jnp.zeros((L, C_out), jnp.float32)
    for k in range(K):
        acc = acc + xs[k:k + L, :] @ w[:, :, k].T
    acc = acc + conv_b[None, :]
    act = acc * jax.nn.sigmoid(acc)
    y = act @ lin_w.T + lin_b[None, :]
    return y[:, 0][None, :]


if __name__ == "__main__":
    hidden_size = 32
    kernel_size = 3
    seq = 16

    key = jax.random.PRNGKey(0)
    kx, kp = jax.random.split(key)
    x = jax.random.normal(kx, (1, seq, hidden_size), jnp.float32)
    conv_w, conv_b, lin_w, lin_b = init_params(kp, hidden_size, kernel_size)

    out = conv_forward(x, conv_w, conv_b, lin_w, lin_b)
    out = jax.block_until_ready(out)

    ref = _reference(x, conv_w, conv_b, lin_w, lin_b)
    assert out.shape == (1, seq - kernel_size + 1), out.shape
    assert jnp.allclose(out, ref, atol=1e-2, rtol=1e-2), (out, ref)

    print("KERNEL_OK")
</pallas_src>

<mosaic_0001>
module attributes {stable_mosaic.version = 11 : i64} {
  func.func @_conv_silu_linear_kernel(%arg0: i32, %arg1: memref<128x32xbf16, #tpu.memory_space<vmem>>, %arg2: memref<8x32xbf16, #tpu.memory_space<vmem>>, %arg3: memref<32x384xbf16, #tpu.memory_space<vmem>>, %arg4: memref<1x128xf32, #tpu.memory_space<vmem>>, %arg5: memref<8x128xf32, #tpu.memory_space<vmem>>, %arg6: memref<1x1xf32, #tpu.memory_space<vmem>>, %arg7: memref<1x1x128xf32, #tpu.memory_space<vmem>>, %arg8: memref<136x384xf32, #tpu.memory_space<vmem>>) attributes {dimension_semantics = [#tpu.dimension_semantics<parallel>], iteration_bounds = array<i64: 1>, scalar_prefetch = 0 : i64, scratch_operands = 1 : i64, tpu.core_type = #tpu.core_type<tc>, window_params = [{transform_indices = @transform_0, window_bounds = array<i64: 128, 32>}, {transform_indices = @transform_1, window_bounds = array<i64: 8, 32>}, {pipeline_mode = #tpu.pipeline_mode<synchronous>, transform_indices = @transform_2, window_bounds = array<i64: 32, 384>}, {pipeline_mode = #tpu.pipeline_mode<synchronous>, transform_indices = @transform_3, window_bounds = array<i64: 1, 128>}, {pipeline_mode = #tpu.pipeline_mode<synchronous>, transform_indices = @transform_4, window_bounds = array<i64: 8, 128>}, {pipeline_mode = #tpu.pipeline_mode<synchronous>, transform_indices = @transform_5, window_bounds = array<i64: 1, 1>}, {transform_indices = @transform_6, window_bounds = array<i64: 1, 1, 128>}]} {
    %c0 = arith.constant 0 : index
    %c0_0 = arith.constant 0 : index
    %0 = vector.load %arg1[%c0, %c0_0] : memref<128x32xbf16, #tpu.memory_space<vmem>>, vector<128x32xbf16>
    %c0_1 = arith.constant 0 : index
    %c0_2 = arith.constant 0 : index
    %1 = vector.load %arg3[%c0_1, %c0_2] : memref<32x384xbf16, #tpu.memory_space<vmem>>, vector<32x384xbf16>
    %cst = arith.constant dense<0.000000e+00> : vector<128x384xf32>
    %2 = tpu.matmul %0, %1, %cst {dimension_numbers = #tpu.dot_dimension_numbers<[1], [0], [0], [1], [0, 0, 1, 1], [], []>} : vector<128x32xbf16>, vector<32x384xbf16>, vector<128x384xf32> -> vector<128x384xf32>
    %c0_3 = arith.constant 0 : index
    %c0_4 = arith.constant 0 : index
    %3 = vector.load %arg8[%c0_3, %c0_4] : memref<136x384xf32, #tpu.memory_space<vmem>>, vector<128x384xf32>
    tpu.vector_store %arg8[%c0_3, %c0_4], %2 {strides = array<i32>} : memref<136x384xf32, #tpu.memory_space<vmem>>, vector<128x384xf32>,
    %c0_5 = arith.constant 0 : index
    %c0_6 = arith.constant 0 : index
    %4 = vector.load %arg2[%c0_5, %c0_6] : memref<8x32xbf16, #tpu.memory_space<vmem>>, vector<8x32xbf16>
    %c0_7 = arith.constant 0 : index
    %c128 = arith.constant 128 : index
    %5 = vector.load %arg3[%c0_7, %c128] : memref<32x384xbf16, #tpu.memory_space<vmem>>, vector<32x256xbf16>
    %cst_8 = arith.constant dense<0.000000e+00> : vector<8x256xf32>
    %6 = tpu.matmul %4, %5, %cst_8 {dimension_numbers = #tpu.dot_dimension_numbers<[1], [0], [0], [1], [0, 0, 1, 1], [], []>} : vector<8x32xbf16>, vector<32x256xbf16>, vector<8x256xf32> -> vector<8x256xf32>
    %c128_9 = arith.constant 128 : index
    %c128_10 = arith.constant 128 : index
    %7 = vector.load %arg8[%c128_9, %c128_10] : memref<136x384xf32, #tpu.memory_space<vmem>>, vector<8x256xf32>
    tpu.vector_store %arg8[%c128_9, %c128_10], %6 {strides = array<i32>} : memref<136x384xf32, #tpu.memory_space<vmem>>, vector<8x256xf32>,
    %c0_11 = arith.constant 0 : index
    %c0_12 = arith.constant 0 : index
    %8 = vector.load %arg4[%c0_11, %c0_12] : memref<1x128xf32, #tpu.memory_space<vmem>>, vector<1x128xf32>
    %c0_13 = arith.constant 0 : index
    %c0_14 = arith.constant 0 : index
    %9 = vector.load %arg8[%c0_13, %c0_14] : memref<136x384xf32, #tpu.memory_space<vmem>>, vector<128x128xf32>
    %10 = vector.broadcast %8 : vector<1x128xf32> to vector<128x128xf32>
    %11 = arith.addf %10, %9 : vector<128x128xf32>
    %c1 = arith.constant 1 : index
    %c128_15 = arith.constant 128 : index
    %12 = vector.load %arg8[%c1, %c128_15] : memref<136x384xf32, #tpu.memory_space<vmem>>, vector<128x128xf32>
    %13 = arith.addf %11, %12 : vector<128x128xf32>
    %c2 = arith.constant 2 : index
    %c256 = arith.constant 256 : index
    %14 = vector.load %arg8[%c2, %c256] : memref<136x384xf32, #tpu.memory_space<vmem>>, vector<128x128xf32>
    %15 = arith.addf %13, %14 : vector<128x128xf32>
    %16 = arith.negf %15 : vector<128x128xf32>
    %17 = math.exp %16 : vector<128x128xf32>
    %cst_16 = arith.constant 1.000000e+00 : f32
    %18 = vector.broadcast %cst_16 : f32 to vector<128x128xf32>
    %19 = arith.addf %18, %17 : vector<128x128xf32>
    %20 = arith.divf %18, %19 : vector<128x128xf32>
    %21 = arith.mulf %15, %20 : vector<128x128xf32>
    %c0_17 = arith.constant 0 : index
    %c0_18 = arith.constant 0 : index
    %22 = vector.load %arg5[%c0_17, %c0_18] : memref<8x128xf32, #tpu.memory_space<vmem>>, vector<8x128xf32>
    %cst_19 = arith.constant dense<0.000000e+00> : vector<8x128xf32>
    %23 = tpu.matmul %22, %21, %cst_19 {dimension_numbers = #tpu.dot_dimension_numbers<[1], [1], [0], [0], [0, 0, 1, 0], [], []>} : vector<8x128xf32>, vector<128x128xf32>, vector<8x128xf32> -> vector<8x128xf32>
    %24 = vector.extract_strided_slice %23 {offsets = [0, 0], sizes = [1, 128], strides = [1, 1]} : vector<8x128xf32> to vector<1x128xf32>
    %c0_20 = arith.constant 0 : index
    %c0_21 = arith.constant 0 : index
    %25 = vector.load %arg6[%c0_20, %c0_21] : memref<1x1xf32, #tpu.memory_space<vmem>>, vector<1x1xf32>
    %26 = vector.broadcast %25 : vector<1x1xf32> to vector<1x128xf32>
    %27 = arith.addf %24, %26 : vector<1x128xf32>
    %28 = vector.shape_cast %27 : vector<1x128xf32> to vector<1x1x128xf32>
    %c0_22 = arith.constant 0 : index
    %c0_23 = arith.constant 0 : index
    %c0_24 = arith.constant 0 : index
    %29 = vector.load %arg7[%c0_22, %c0_23, %c0_24] : memref<1x1x128xf32, #tpu.memory_space<vmem>>, vector<1x1x128xf32>
    tpu.vector_store %arg7[%c0_22, %c0_23, %c0_24], %28 {strides = array<i32>} : memref<1x1x128xf32, #tpu.memory_space<vmem>>, vector<1x1x128xf32>,
    return
  }
  func.func @transform_0(%arg0: i32) -> (i32, i32) {
    %c0_i32 = arith.constant 0 : i32
    %c0_i32_0 = arith.constant 0 : i32
    return %arg0, %c0_i32 : i32, i32
  }
  func.func @transform_1(%arg0: i32) -> (i32, i32) {
    %c1_i32 = arith.constant 1 : i32
    %0 = arith.addi %arg0, %c1_i32 : i32
    %c16_i32 = arith.constant 16 : i32
    %1 = arith.muli %0, %c16_i32 : i32
    %c0_i32 = arith.constant 0 : i32
    %c0_i32_0 = arith.constant 0 : i32
    return %1, %c0_i32 : i32, i32
  }
  func.func @transform_2(%arg0: i32) -> (i32, i32) {
    %c0_i32 = arith.constant 0 : i32
    %c0_i32_0 = arith.constant 0 : i32
    %c0_i32_1 = arith.constant 0 : i32
    return %c0_i32, %c0_i32_0 : i32, i32
  }
  func.func @transform_3(%arg0: i32) -> (i32, i32) {
    %c0_i32 = arith.constant 0 : i32
    %c0_i32_0 = arith.constant 0 : i32
    %c0_i32_1 = arith.constant 0 : i32
    return %c0_i32, %c0_i32_0 : i32, i32
  }
  func.func @transform_4(%arg0: i32) -> (i32, i32) {
    %c0_i32 = arith.constant 0 : i32
    %c0_i32_0 = arith.constant 0 : i32
    %c0_i32_1 = arith.constant 0 : i32
    return %c0_i32, %c0_i32_0 : i32, i32
  }
  func.func @transform_5(%arg0: i32) -> (i32, i32) {
    %c0_i32 = arith.constant 0 : i32
    %c0_i32_0 = arith.constant 0 : i32
    %c0_i32_1 = arith.constant 0 : i32
    return %c0_i32, %c0_i32_0 : i32, i32
  }
  func.func @transform_6(%arg0: i32) -> (i32, i32, i32) {
    %c0_i32 = arith.constant 0 : i32
    %c0_i32_0 = arith.constant 0 : i32
    %c0_i32_1 = arith.constant 0 : i32
    return %arg0, %c0_i32, %c0_i32_0 : i32, i32, i32
  }
}

module attributes {stable_mosaic.version = 11 : i64} {
  func.func @_conv_silu_linear_kernel(%arg0: i32, %arg1: memref<128x32xbf16, #tpu.memory_space<vmem>>, %arg2: memref<8x32xbf16, #tpu.memory_space<vmem>>, %arg3: memref<32x384xbf16, #tpu.memory_space<vmem>>, %arg4: memref<1x128xf32, #tpu.memory_space<vmem>>, %arg5: memref<8x128xf32, #tpu.memory_space<vmem>>, %arg6: memref<1x1xf32, #tpu.memory_space<vmem>>, %arg7: memref<1x1x128xf32, #tpu.memory_space<vmem>>, %arg8: memref<136x384xf32, #tpu.memory_space<vmem>>) attributes {dimension_semantics = [#tpu.dimension_semantics<parallel>], iteration_bounds = array<i64: 1>, scalar_prefetch = 0 : i64, scratch_operands = 1 : i64, tpu.core_type = #tpu.core_type<tc>, window_params = [{transform_indices = @transform_0, window_bounds = array<i64: 128, 32>}, {transform_indices = @transform_1, window_bounds = array<i64: 8, 32>}, {pipeline_mode = #tpu.pipeline_mode<synchronous>, transform_indices = @transform_2, window_bounds = array<i64: 32, 384>}, {pipeline_mode = #tpu.pipeline_mode<synchronous>, transform_indices = @transform_3, window_bounds = array<i64: 1, 128>}, {pipeline_mode = #tpu.pipeline_mode<synchronous>, transform_indices = @transform_4, window_bounds = array<i64: 8, 128>}, {pipeline_mode = #tpu.pipeline_mode<synchronous>, transform_indices = @transform_5, window_bounds = array<i64: 1, 1>}, {transform_indices = @transform_6, window_bounds = array<i64: 1, 1, 128>}]} {
    %c0 = arith.constant 0 : index
    %c0_0 = arith.constant 0 : index
    %0 = vector.load %arg1[%c0, %c0_0] : memref<128x32xbf16, #tpu.memory_space<vmem>>, vector<128x32xbf16>
    %c0_1 = arith.constant 0 : index
    %c0_2 = arith.constant 0 : index
    %1 = vector.load %arg3[%c0_1, %c0_2] : memref<32x384xbf16, #tpu.memory_space<vmem>>, vector<32x384xbf16>
    %cst = arith.constant dense<0.000000e+00> : vector<128x384xf32>
    %2 = tpu.matmul %0, %1, %cst {dimension_numbers = #tpu.dot_dimension_numbers<[1], [0], [0], [1], [0, 0, 1, 1], [], []>} : vector<128x32xbf16>, vector<32x384xbf16>, vector<128x384xf32> -> vector<128x384xf32>
    %c0_3 = arith.constant 0 : index
    %c0_4 = arith.constant 0 : index
    %3 = vector.load %arg8[%c0_3, %c0_4] : memref<136x384xf32, #tpu.memory_space<vmem>>, vector<128x384xf32>
    tpu.vector_store %arg8[%c0_3, %c0_4], %2 {strides = array<i32>} : memref<136x384xf32, #tpu.memory_space<vmem>>, vector<128x384xf32>,
    %c0_5 = arith.constant 0 : index
    %c0_6 = arith.constant 0 : index
    %4 = vector.load %arg2[%c0_5, %c0_6] : memref<8x32xbf16, #tpu.memory_space<vmem>>, vector<8x32xbf16>
    %c0_7 = arith.constant 0 : index
    %c128 = arith.constant 128 : index
    %5 = vector.load %arg3[%c0_7, %c128] : memref<32x384xbf16, #tpu.memory_space<vmem>>, vector<32x256xbf16>
    %cst_8 = arith.constant dense<0.000000e+00> : vector<8x256xf32>
    %6 = tpu.matmul %4, %5, %cst_8 {dimension_numbers = #tpu.dot_dimension_numbers<[1], [0], [0], [1], [0, 0, 1, 1], [], []>} : vector<8x32xbf16>, vector<32x256xbf16>, vector<8x256xf32> -> vector<8x256xf32>
    %c128_9 = arith.constant 128 : index
    %c128_10 = arith.constant 128 : index
    %7 = vector.load %arg8[%c128_9, %c128_10] : memref<136x384xf32, #tpu.memory_space<vmem>>, vector<8x256xf32>
    tpu.vector_store %arg8[%c128_9, %c128_10], %6 {strides = array<i32>} : memref<136x384xf32, #tpu.memory_space<vmem>>, vector<8x256xf32>,
    %c0_11 = arith.constant 0 : index
    %c0_12 = arith.constant 0 : index
    %8 = vector.load %arg4[%c0_11, %c0_12] : memref<1x128xf32, #tpu.memory_space<vmem>>, vector<1x128xf32>
    %c0_13 = arith.constant 0 : index
    %c0_14 = arith.constant 0 : index
    %9 = vector.load %arg8[%c0_13, %c0_14] : memref<136x384xf32, #tpu.memory_space<vmem>>, vector<128x128xf32>
    %10 = vector.broadcast %8 : vector<1x128xf32> to vector<128x128xf32>
    %11 = arith.addf %10, %9 : vector<128x128xf32>
    %c1 = arith.constant 1 : index
    %c128_15 = arith.constant 128 : index
    %12 = vector.load %arg8[%c1, %c128_15] : memref<136x384xf32, #tpu.memory_space<vmem>>, vector<128x128xf32>
    %13 = arith.addf %11, %12 : vector<128x128xf32>
    %c2 = arith.constant 2 : index
    %c256 = arith.constant 256 : index
    %14 = vector.load %arg8[%c2, %c256] : memref<136x384xf32, #tpu.memory_space<vmem>>, vector<128x128xf32>
    %15 = arith.addf %13, %14 : vector<128x128xf32>
    %16 = arith.negf %15 : vector<128x128xf32>
    %17 = math.exp %16 : vector<128x128xf32>
    %cst_16 = arith.constant 1.000000e+00 : f32
    %18 = vector.broadcast %cst_16 : f32 to vector<128x128xf32>
    %19 = arith.addf %18, %17 : vector<128x128xf32>
    %20 = arith.divf %18, %19 : vector<128x128xf32>
    %21 = arith.mulf %15, %20 : vector<128x128xf32>
    %c0_17 = arith.constant 0 : index
    %c0_18 = arith.constant 0 : index
    %22 = vector.load %arg5[%c0_17, %c0_18] : memref<8x128xf32, #tpu.memory_space<vmem>>, vector<8x128xf32>
    %cst_19 = arith.constant dense<0.000000e+00> : vector<8x128xf32>
    %23 = tpu.matmul %22, %21, %cst_19 {dimension_numbers = #tpu.dot_dimension_numbers<[1], [1], [0], [0], [0, 0, 1, 0], [], []>} : vector<8x128xf32>, vector<128x128xf32>, vector<8x128xf32> -> vector<8x128xf32>
    %24 = vector.extract_strided_slice %23 {offsets = [0, 0], sizes = [1, 128], strides = [1, 1]} : vector<8x128xf32> to vector<1x128xf32>
    %c0_20 = arith.constant 0 : index
    %c0_21 = arith.constant 0 : index
    %25 = vector.load %arg6[%c0_20, %c0_21] : memref<1x1xf32, #tpu.memory_space<vmem>>, vector<1x1xf32>
    %26 = vector.broadcast %25 : vector<1x1xf32> to vector<1x128xf32>
    %27 = arith.addf %24, %26 : vector<1x128xf32>
    %28 = vector.shape_cast %27 : vector<1x128xf32> to vector<1x1x128xf32>
    %c0_22 = arith.constant 0 : index
    %c0_23 = arith.constant 0 : index
    %c0_24 = arith.constant 0 : index
    %29 = vector.load %arg7[%c0_22, %c0_23, %c0_24] : memref<1x1x128xf32, #tpu.memory_space<vmem>>, vector<1x1x128xf32>
    tpu.vector_store %arg7[%c0_22, %c0_23, %c0_24], %28 {strides = array<i32>} : memref<1x1x128xf32, #tpu.memory_space<vmem>>, vector<1x1x128xf32>,
    return
  }
  func.func @transform_0(%arg0: i32) -> (i32, i32) {
    %c0_i32 = arith.constant 0 : i32
    %c0_i32_0 = arith.constant 0 : i32
    return %arg0, %c0_i32 : i32, i32
  }
  func.func @transform_1(%arg0: i32) -> (i32, i32) {
    %c1_i32 = arith.constant 1 : i32
    %0 = arith.addi %arg0, %c1_i32 : i32
    %c16_i32 = arith.constant 16 : i32
    %1 = arith.muli %0, %c16_i32 : i32
    %c0_i32 = arith.constant 0 : i32
    %c0_i32_0 = arith.constant 0 : i32
    return %1, %c0_i32 : i32, i32
  }
  func.func @transform_2(%arg0: i32) -> (i32, i32) {
    %c0_i32 = arith.constant 0 : i32
    %c0_i32_0 = arith.constant 0 : i32
    %c0_i32_1 = arith.constant 0 : i32
    return %c0_i32, %c0_i32_0 : i32, i32
  }
  func.func @transform_3(%arg0: i32) -> (i32, i32) {
    %c0_i32 = arith.constant 0 : i32
    %c0_i32_0 = arith.constant 0 : i32
    %c0_i32_1 = arith.constant 0 : i32
    return %c0_i32, %c0_i32_0 : i32, i32
  }
  func.func @transform_4(%arg0: i32) -> (i32, i32) {
    %c0_i32 = arith.constant 0 : i32
    %c0_i32_0 = arith.constant 0 : i32
    %c0_i32_1 = arith.constant 0 : i32
    return %c0_i32, %c0_i32_0 : i32, i32
  }
  func.func @transform_5(%arg0: i32) -> (i32, i32) {
    %c0_i32 = arith.constant 0 : i32
    %c0_i32_0 = arith.constant 0 : i32
    %c0_i32_1 = arith.constant 0 : i32
    return %c0_i32, %c0_i32_0 : i32, i32
  }
  func.func @transform_6(%arg0: i32) -> (i32, i32, i32) {
    %c0_i32 = arith.constant 0 : i32
    %c0_i32_0 = arith.constant 0 : i32
    %c0_i32_1 = arith.constant 0 : i32
    return %arg0, %c0_i32, %c0_i32_0 : i32, i32, i32
  }
}

</mosaic_0001>

<bundles_post_ra>
// kernel: tpu_custom_call.1
= control target key start
LH: loop header
LB: loop body
LE: loop exit
PB: predicated region body
PF: predicated region fallthrough
CT: control target
= control target key end

     0   :  { %s1510_s0 = inlined_call_operand.vmem [shape: bf16[136,32], index: 0, kind: input, shape index: {}]   ;;  %s1511_s1 = inlined_call_operand.vmem [shape: bf16[136,32], index: 1, kind: input, shape index: {}]   ;;  %s1512_s2 = inlined_call_operand.vmem [shape: bf16[32,384], index: 2, kind: input, shape index: {}]   ;;  %s1513_s3 = inlined_call_operand.vmem [shape: f32[1,128], index: 3, kind: input, shape index: {}]   ;;  %s1514_s4 = inlined_call_operand.vmem [shape: f32[8,128], index: 4, kind: input, shape index: {}]   ;;  %s1515_s5 = inlined_call_operand.<no memory space> [shape: f32[1,1], index: 5, kind: input, shape index: {}]   ;;  %s1516_s6 = inlined_call_operand.hbm [shape: f32[1,1,128], index: 6, kind: output, shape index: {}]  }
   0x1   :  { %v11_v0 = vstv %s1515_s5 }
   0x2   :  { %12 = vst [vmem:[#allocation3] sm:$0x1] %v11_v0 }
   0x3   :  { %v1118_v1 = vld [vmem:[%s1512_s2 + $0x4] ss:$12 sps:$4 sm:$0xff]   ;;  %v1120_v2 = vld [vmem:[%s1512_s2 + $0x8] ss:$12 sps:$4 sm:$0xff]   ;;  %v1228_v3 = vmov 0   ;;  %vm145_vm0 = vcmask 261120  }
   0x4   :  { %202 = vmatprep.mubr.bf16.mxu0 %v1228_v3  ;;  %1117 = vset.pattern.permute.xlu0 %v1228_v3  ;;  %v1121_v4 = vld [vmem:[%s1512_s2] ss:$12 sps:$4 sm:$0xff]   ;;  %v1122_v5 = vld [vmem:[%s1512_s2 + $0x1c] ss:$12 sps:$4 sm:$0xff]   ;;  %v1125_v7 = vld [vmem:[%s1512_s2 + $0x18] ss:$12 sps:$4 sm:$0xff]  }
   0x5   :  { %170 = vmatprep.subr.bf16.mxu0 %v1118_v1  ;;  %1033 = vmatprep.subr.bf16.mxu1 %v1120_v2  ;;  %v1124_v6 = vld [vmem:[%s1512_s2 + $0x20] ss:$12 sps:$4 sm:$0xff]   ;;  %v1128_v10 = vld [vmem:[%s1510_s0 + $0x10] sm:$0xff]   ;;  %v1129_v13 = vld [vmem:[%s1510_s0 + $0x18] sm:$0xff]  }
   0x6   :  { %171 = vmatpush1.bf16.msra.mxu0 %v1121_v4  ;;  %1034 = vmatpush3.bf16.msra.mxu1 %v1120_v2  ;;  %v1126_v8 = vld [vmem:[%s1510_s0] sm:$0xff]   ;;  %v1127_v9 = vld [vmem:[%s1510_s0 + $0x8] sm:$0xff]  }
   0x7   :  { %172 = vmatprep.subr.bf16.mxu0 %v1122_v5  ;;  %1035 = vmatprep.subr.bf16.mxu1 %v1124_v6  ;;  %v1134_v11 = vld [vmem:[%s1512_s2 + $0x4] ss:$12 sps:$4 sm:$0xff]   ;;  %v1136_v12 = vld [vmem:[%s1512_s2 + $0x8] ss:$12 sps:$4 sm:$0xff]   ;;  %v1139_v14 = vld [vmem:[%s1512_s2 + $0x20] ss:$12 sps:$4 sm:$0xff]  }
   0x8   :  { %1037 = vmatprep.mubr.msk.bf16.mxu1 %vm145_vm0, %v1126_v8 }
   0xa   :  { %173 = vmatpush1.bf16.msra.mxu0 %v1125_v7  ;;  %1036 = vmatpush3.bf16.msra.mxu1 %v1124_v6 }
   0xb   :  { %456 = vmatprep.subr.bf16.mxu1 %v1136_v12 }
   0xd   :  { %967 = vmatmul.mubr.msk.bf16.vlgmr.msra.gmra.mrb[0].mxu0 %vm145_vm0, %v1126_v8  ;;  %1038 = vmatmul.mubr.msk.bf16.vlgmr.msra.gmra.mrb[0].mxu1 %vm145_vm0, %v1127_v9 }
   0xe   :  { %212 = vmatprep.mubr.bf16.mxu0 %v1228_v3  ;;  %1041 = vmatprep.mubr.msk.bf16.mxu1 %vm145_vm0, %v1128_v10 }
   0xf   :  { %13 = vsyncpa [#allocation5], 0  ;;  %v1130_v15 = vld [vmem:[%s1510_s0 + $0x20] sm:$0xff]   ;;  %457 = vmatpush1.bf16.msra.mxu1 %v1134_v11  ;;  %v1137_v16 = vld [vmem:[%s1512_s2 + $0x1c] ss:$12 sps:$4 sm:$0xff]   ;;  %v1229_v21 = vmov 0.0|0.0  }
  0x10   :  { %458 = vmatprep.subr.bf16.mxu1 %v1139_v14  ;;  %v1131_v17 = vld [vmem:[%s1510_s0 + $0x28] sm:$0xff]   ;;  %v1132_v18 = vld [vmem:[%s1510_s0 + $0x30] sm:$0xff]   ;;  %v1133_v19 = vld [vmem:[%s1510_s0 + $0x38] sm:$0xff]   ;;  %1088 = vmatprep.subr.bf16.mxu0 %v1229_v21  ;;  %vm1230_vm1 = vmmov 0   ;;  %v1231_v22 = vmov 0.0   ;;  %vm672_vm2 = vcmask 1045504  }
  0x11   :  { %v983_v20 = vld [vmem:[%s1511_s1 + $0x40] sm:$0xf]  ;;  %v921_v23 = vld [vmem:[#allocation3] sm:$0x1]  ;;  %vm572_vm3 = vcmask 1046528   ;;  %s1232_s11 = smov [#allocation4]  }
  0x12   :  { %924 = vperm.xlu0 %1117, %v921_v23   ;;  %v1351_v39 = vld [vmem:[%s1513_s3] ss:$0 sm:$0xff]  ;;  %s939_s12 = sshll.u32 %s1232_s11, 4  ;;  %s940_s12 = int_to_ptr.vmem [resolvable:$true] %s939_s12 }
  0x13   :  { %459 = vmatpush1.bf16.msra.mxu1 %v1137_v16  ;;  %s1204_s13 = scalar_lea.vmem %s940_s12, 16  ;;  %s1208_s14 = scalar_lea.vmem %s940_s12, 32 }
  0x14   :  { %p1205_p0 = scmp.ne.s32.totalorder %s940_s12, %s1204_s13  ;;  %p1209_p1 = scmp.lt.s32.totalorder %s940_s12, %s940_s12 }
  0x15   :  { %968 = vmatmul.mubr.msk.bf16.gmra.mrb[4].mxu0 %vm145_vm0, %v1127_v9  ;;  %1042 = vmatmul.mubr.msk.bf16.gmra.mrb[4].mxu1 %vm145_vm0, %v1129_v13  ;;  %p1210_p2 = scmp.lt.s32.totalorder %s1208_s14, %s1204_s13 }
  0x16   :  { %222 = vmatprep.mubr.bf16.mxu0 %v1228_v3  ;;  %1045 = vmatprep.mubr.msk.bf16.mxu1 %vm145_vm0, %v1130_v15 }
  0x17   :  { %p1211_p3 = por %p1210_p2, %p1209_p1 }
  0x19   :  { %p1212_p4 = pnand %p1211_p3, %p1205_p0 }
  0x1d   :  { %969 = vmatmul.mubr.msk.bf16.gmra.mrb[8].mxu0 %vm145_vm0, %v1128_v10  ;;  %1046 = vmatmul.mubr.msk.bf16.gmra.mrb[8].mxu1 %vm145_vm0, %v1131_v17 }
  0x1e   :  { %232 = vmatprep.mubr.bf16.mxu0 %v1228_v3  ;;  %1049 = vmatprep.mubr.msk.bf16.mxu1 %vm145_vm0, %v1132_v18 }
  0x25   :  { %970 = vmatmul.mubr.msk.bf16.gmra.mrb[12].mxu0 %vm145_vm0, %v1129_v13  ;;  %1050 = vmatmul.mubr.msk.bf16.gmra.mrb[12].mxu1 %vm145_vm0, %v1133_v19 }
  0x26   :  { %242 = vmatprep.mubr.bf16.mxu0 %v1228_v3  ;;  %488 = vmatprep.mubr.bf16.mxu1 %v1228_v3 }
  0x2d   :  { %971 = vmatmul.mubr.msk.bf16.gmra.mrb[16].mxu0 %vm145_vm0, %v1130_v15  ;;  %988 = vmatmul.mubr.msk.bf16.vlgmr.msra.gmra.mrb[16].mxu1 %vm145_vm0, %v983_v20 }
  0x2e   :  { %252 = vmatprep.mubr.bf16.mxu0 %v1228_v3 }
  0x35   :  { %972 = vmatmul.mubr.msk.bf16.gmra.mrb[20].mxu0 %vm145_vm0, %v1131_v17 }
  0x36   :  { %262 = vmatprep.mubr.bf16.mxu0 %v1228_v3 }
  0x3d   :  { %973 = vmatmul.mubr.msk.bf16.gmra.mrb[24].mxu0 %vm145_vm0, %v1132_v18 }
  0x3e   :  { %272 = vmatprep.mubr.bf16.mxu0 %v1228_v3 }
  0x45   :  { %974 = vmatmul.mubr.msk.bf16.gmra.mrb[28].mxu0 %vm145_vm0, %v1133_v19 }
  0x46   :  { %1085 = vmatprep.mubr.msk.f32.mxu0 %vm1230_vm1, %v1231_v22 }
  0xe0   :  { %v204_v24 = vpop.f32.mrb[0].mxu0  ;;  %v1039_v25 = vpop.f32.mrb[0].mxu1 }
  0xe1   :  { %v206_v26 = vpop.f32.mrb[1].mxu0  ;;  %v317_v27 = vpop.f32.mrb[1].mxu1  ;;  %v676_v28 = vrot.slane %v1039_v25, 2  ;;  %v522_v53 = vadd.f32 %v1351_v39, %v204_v24 }
  0xe2   :  { %381 = vst [vmem:[#allocation2 + $0x8] sm:$0xff] %v206_v26  ;;  %v208_v29 = vpop.f32.mrb[2].mxu0  ;;  %382 = vst [vmem:[#allocation2 + $0x10] sm:$0xff] %v317_v27  ;;  %v1040_v30 = vpop.f32.mrb[2].mxu1 }
  0xe3   :  { %v210_v31 = vpop.f32.mrb[3].mxu0  ;;  %v320_v32 = vpop.f32.mrb[3].mxu1  ;;  %v678_v33 = vrot.slane %v1040_v30, 2  ;;  %v523_v54 = vadd.f32 %v1351_v39, %v208_v29 }
  0xe4   :  { %v674_v34 = vrot.slane %v320_v32, 2  ;;  %v574_v40 = vrot.slane %v210_v31, 1 }
  0xe5   :  { %v679_v35 = vsel %vm672_vm2, %v676_v28, %v678_v33 }
  0xe6   :  { %v677_v36 = vsel %vm672_vm2, %v674_v34, %v676_v28 }
  0xe8   :  { %v214_v37 = vpop.f32.mrb[4].mxu0  ;;  %v1043_v38 = vpop.f32.mrb[4].mxu1 }
  0xe9   :  { %v216_v41 = vpop.f32.mrb[5].mxu0  ;;  %v333_v42 = vpop.f32.mrb[5].mxu1  ;;  %v538_v43 = vld [vmem:[#allocation2 + $0x8] sm:$0xfe]  ;;  %v638_v44 = vld [vmem:[#allocation2 + $0x10] sm:$0xfc]  ;;  %v524_v59 = vadd.f32 %v1351_v39, %v214_v37 }
  0xea   :  { %v218_v45 = vpop.f32.mrb[6].mxu0  ;;  %v1044_v46 = vpop.f32.mrb[6].mxu1  ;;  %v573_v47 = vrot.slane %v538_v43, 1  ;;  %v576_v48 = vrot.slane %v216_v41, 1  ;;  %v673_v49 = vrot.slane %v638_v44, 2  ;;  %v680_v50 = vrot.slane %v333_v42, 2 }
  0xeb   :  { %v220_v51 = vpop.f32.mrb[7].mxu0  ;;  %v336_v52 = vpop.f32.mrb[7].mxu1  ;;  %v684_v55 = vrot.slane %v1043_v38, 2  ;;  %v686_v56 = vrot.slane %v1044_v46, 2  ;;  %v525_v18 = vadd.f32 %v1351_v39, %v218_v45 }
  0xec   :  { %v575_v57 = vsel %vm572_vm3, %v573_v47, %v574_v40  ;;  %v577_v58 = vsel %vm572_vm3, %v574_v40, %v576_v48  ;;  %v578_v60 = vrot.slane %v220_v51, 1  ;;  %v681_v63 = vsel %vm672_vm2, %v678_v33, %v680_v50 }
  0xed   :  { %v622_v61 = vadd.f32 %v575_v57, %v522_v53  ;;  %v623_v62 = vadd.f32 %v577_v58, %v523_v54  ;;  %v682_v0 = vrot.slane %v336_v52, 2  ;;  %v675_v1 = vsel %vm672_vm2, %v673_v49, %v674_v34 }
  0xee   :  { %v579_v2 = vsel %vm572_vm3, %v576_v48, %v578_v60  ;;  %v1362_v3 = vsel %vm672_vm2, %v684_v55, %v686_v56 }
  0xef   :  { %v1364_v4 = vadd.f32 %v675_v1, %v622_v61  ;;  %v1366_v5 = vadd.f32 %v677_v36, %v623_v62  ;;  %v624_v6 = vadd.f32 %v579_v2, %v524_v59  ;;  %v683_v7 = vsel %vm672_vm2, %v680_v50, %v682_v0 }
  0xf0   :  { %v224_v8 = vpop.f32.mrb[8].mxu0  ;;  %v1047_v9 = vpop.f32.mrb[8].mxu1  ;;  %v1370_v10 = vsel %vm672_vm2, %v682_v0, %v684_v55 }
  0xf1   :  { %v226_v11 = vpop.f32.mrb[9].mxu0  ;;  %v349_v12 = vpop.f32.mrb[9].mxu1  ;;  %v990_v13 = vmul.f32 -1.442695, %v1364_v4  ;;  %v991_v14 = vmul.f32 -1.442695, %v1366_v5  ;;  %v1374_v15 = vadd.f32 %v679_v35, %v624_v6  ;;  %v526_v26 = vadd.f32 %v1351_v39, %v224_v8 }
  0xf2   :  { %v228_v16 = vpop.f32.mrb[10].mxu0  ;;  %v1048_v17 = vpop.f32.mrb[10].mxu1  ;;  %v580_v19 = vrot.slane %v226_v11, 1  ;;  %v688_v20 = vrot.slane %v349_v12, 2  ;;  %v692_v22 = vrot.slane %v1047_v9, 2 }
  0xf3   :  { %v230_v23 = vpop.f32.mrb[11].mxu0  ;;  %v352_v24 = vpop.f32.mrb[11].mxu1  ;;  %1140 = vpow2.f32 %v990_v13  ;;  %v992_v25 = vmul.f32 -1.442695, %v1374_v15  ;;  %v694_v27 = vrot.slane %v1048_v17, 2  ;;  %v527_v53 = vadd.f32 %v1351_v39, %v228_v16 }
  0xf4   :  { %1142 = vpow2.f32 %v991_v14  ;;  %v581_v28 = vsel %vm572_vm3, %v578_v60, %v580_v19  ;;  %v582_v29 = vrot.slane %v230_v23, 1  ;;  %v1381_v30 = vsel %vm672_vm2, %v686_v56, %v688_v20 }
  0xf5   :  { %v625_v31 = vadd.f32 %v581_v28, %v525_v18  ;;  %1144 = vpow2.f32 %v992_v25  ;;  %v690_v32 = vrot.slane %v352_v24, 2  ;;  %v1384_v33 = vsel %vm672_vm2, %v692_v22, %v694_v27 }
  0xf6   :  { %v583_v34 = vsel %vm572_vm3, %v580_v19, %v582_v29 }
  0xf7   :  { %v1387_v35 = vadd.f32 %v681_v63, %v625_v31  ;;  %v626_v36 = vadd.f32 %v583_v34, %v526_v26  ;;  %v1390_v37 = vsel %vm672_vm2, %v688_v20, %v690_v32  ;;  %v1393_v38 = vsel %vm672_vm2, %v690_v32, %v692_v22 }
  0xf8   :  { %v234_v40 = vpop.f32.mrb[12].mxu0  ;;  %v1051_v41 = vpop.f32.mrb[12].mxu1 }
  0xf9   :  { %v236_v42 = vpop.f32.mrb[13].mxu0  ;;  %v365_v43 = vpop.f32.mrb[13].mxu1  ;;  %v993_v44 = vmul.f32 -1.442695, %v1387_v35  ;;  %v1396_v45 = vadd.f32 %v683_v7, %v626_v36  ;;  %v700_v46 = vrot.slane %v1051_v41, 2  ;;  %v528_v62 = vadd.f32 %v1351_v39, %v234_v40 }
  0xfa   :  { %v238_v47 = vpop.f32.mrb[14].mxu0  ;;  %v1398_v48 = vpop.f32.mrb[14].mxu1  ;;  %v584_v49 = vrot.slane %v236_v42, 1  ;;  %v696_v50 = vrot.slane %v365_v43, 2 }
  0xfb   :  { %v240_v51 = vpop.f32.mrb[15].mxu0  ;;  %v368_v52 = vpop.f32.mrb[15].mxu1  ;;  %1146 = vpow2.f32 %v993_v44  ;;  %v994_v54 = vmul.f32 -1.442695, %v1396_v45  ;;  %v702_v55 = vrot.slane %v1398_v48, 2  ;;  %v529_v26 = vadd.f32 %v1351_v39, %v238_v47 }
  0xfc   :  { %v585_v56 = vsel %vm572_vm3, %v582_v29, %v584_v49  ;;  %v586_v57 = vrot.slane %v240_v51, 1  ;;  %v1405_v58 = vsel %vm672_vm2, %v694_v27, %v696_v50  ;;  %v698_v59 = vrot.slane %v368_v52, 2 }
  0xfd   :  { %v1141_v60 = vpop.eup %1140  ;;  %v627_v61 = vadd.f32 %v585_v56, %v527_v53  ;;  %1148 = vpow2.f32 %v994_v54  ;;  %v1411_v63 = vsel %vm672_vm2, %v700_v46, %v702_v55 }
  0xfe   :  { %v1143_v0 = vpop.eup %1142  ;;  %v786_v1 = vadd.f32 1.0, %v1141_v60  ;;  %v587_v2 = vsel %vm572_vm3, %v584_v49, %v586_v57  ;;  %v1415_v6 = vsel %vm672_vm2, %v696_v50, %v698_v59  ;;  %v1418_v7 = vsel %vm672_vm2, %v698_v59, %v700_v46 }
  0xff   :  { %v1145_v8 = vpop.eup %1144  ;;  %v787_v9 = vadd.f32 1.0, %v1143_v0  ;;  %v1421_v11 = vadd.f32 %v1370_v10, %v627_v61  ;;  %v628_v12 = vadd.f32 %v587_v2, %v528_v62 }
 0x100   :  { %v244_v13 = vpop.f32.mrb[16].mxu0  ;;  %v490_v14 = vpop.f32.mrb[16].mxu1  ;;  %1150 = vrcp.f32 %v786_v1  ;;  %v788_v22 = vadd.f32 1.0, %v1145_v8 }
 0x101   :  { %v246_v16 = vpop.f32.mrb[17].mxu0  ;;  %497 = vst [vmem:[#allocation2 + $0x188] sm:$0xff] %v490_v14  ;;  %v492_v17 = vpop.f32.mrb[17].mxu1  ;;  %1152 = vrcp.f32 %v787_v9  ;;  %v995_v18 = vmul.f32 -1.442695, %v1421_v11  ;;  %v1425_v19 = vadd.f32 %v1362_v3, %v628_v12  ;;  %v530_v3 = vadd.f32 %v1351_v39, %v244_v13 }
 0x102   :  { %v248_v20 = vpop.f32.mrb[18].mxu0  ;;  %498 = vst [vmem:[#allocation2 + $0x190] sm:$0xff] %v492_v17  ;;  %v494_v23 = vpop.f32.mrb[18].mxu1  ;;  %v588_v24 = vrot.slane %v246_v16, 1 }
 0x103   :  { %v250_v10 = vpop.f32.mrb[19].mxu0  ;;  %v495_v25 = vpop.f32.mrb[19].mxu1  ;;  %1154 = vpow2.f32 %v995_v18  ;;  %v996_v27 = vmul.f32 -1.442695, %v1425_v19 }
 0x104   :  { %v589_v28 = vsel %vm572_vm3, %v586_v57, %v588_v24  ;;  %v590_v29 = vrot.slane %v250_v10, 1 }
 0x105   :  { %v1147_v31 = vpop.eup %1146  ;;  %v629_v32 = vadd.f32 %v589_v28, %v529_v26  ;;  %1156 = vpow2.f32 %v996_v27 }
 0x106   :  { %v789_v34 = vadd.f32 1.0, %v1147_v31  ;;  %1158 = vrcp.f32 %v788_v22  ;;  %v591_v36 = vsel %vm572_vm3, %v588_v24, %v590_v29 }
 0x107   :  { %v1149_v40 = vpop.eup %1148  ;;  %v1433_v41 = vadd.f32 %v1381_v30, %v629_v32  ;;  %v630_v42 = vadd.f32 %v591_v36, %v530_v3  ;;  %v531_v30 = vadd.f32 %v1351_v39, %v248_v20 }
 0x108   :  { %v254_v43 = vpop.f32.mrb[20].mxu0  ;;  %1160 = vrcp.f32 %v789_v34  ;;  %v790_v51 = vadd.f32 1.0, %v1149_v40  ;;  %v554_v40 = vld [vmem:[#allocation2 + $0x188] sm:$0x1] }
 0x109   :  { %v256_v44 = vpop.f32.mrb[21].mxu0  ;;  %v997_v46 = vmul.f32 -1.442695, %v1433_v41  ;;  %v1437_v47 = vadd.f32 %v1390_v37, %v630_v42  ;;  %v532_v0 = vadd.f32 %v1351_v39, %v254_v43 }
 0x10a   :  { %v1151_v49 = vpop.eup %1150  ;;  %v258_v50 = vpop.f32.mrb[22].mxu0  ;;  %v592_v52 = vrot.slane %v256_v44, 1 }
 0x10b   :  { %v1153_v53 = vpop.eup %1152  ;;  %v260_v54 = vpop.f32.mrb[23].mxu0  ;;  %v834_v56 = vmul.f32 %v1151_v49, %v1364_v4  ;;  %1162 = vpow2.f32 %v997_v46  ;;  %v998_v57 = vmul.f32 -1.442695, %v1437_v47  ;;  %v533_v23 = vadd.f32 %v1351_v39, %v258_v50  ;;  %v654_v50 = vld [vmem:[#allocation2 + $0x190] sm:$0x3] }
 0x10c   :  { %v835_v59 = vmul.f32 %v1153_v53, %v1366_v5  ;;  %v593_v60 = vsel %vm572_vm3, %v590_v29, %v592_v52  ;;  %v594_v61 = vrot.slane %v260_v54, 1 }
 0x10d   :  { %v1155_v37 = vpop.eup %1154  ;;  %v631_v62 = vadd.f32 %v593_v60, %v531_v30  ;;  %1164 = vpow2.f32 %v998_v57 }
 0x10e   :  { %v1089_v1 = vpack.c.bf16 %v835_v59, %v834_v56  ;;  %v791_v2 = vadd.f32 1.0, %v1155_v37  ;;  %1166 = vrcp.f32 %v790_v51  ;;  %v595_v4 = vsel %vm572_vm3, %v592_v52, %v594_v61 }
 0x10f   :  { %v1157_v8 = vpop.eup %1156  ;;  %v1447_v9 = vadd.f32 %v1393_v38, %v631_v62  ;;  %v632_v12 = vadd.f32 %v595_v4, %v532_v0  ;;  %v604_v56 = vrot.slane %v554_v40, 1  ;;  %v704_v62 = vrot.slane %v654_v50, 2 }
 0x110   :  { %v1159_v13 = vpop.eup %1158  ;;  %v264_v5 = vpop.f32.mrb[24].mxu0  ;;  %1090 = vmatpush3.bf16.xpose.msra.mxu0 %v1089_v1  ;;  %1168 = vrcp.f32 %v791_v2  ;;  %v792_v14 = vadd.f32 1.0, %v1157_v8 }
 0x111   :  { %v266_v16 = vpop.f32.mrb[25].mxu0  ;;  %1091 = vmatprep.subr.bf16.mxu0 %v1229_v21  ;;  %v999_v17 = vmul.f32 -1.442695, %v1447_v9  ;;  %v1452_v18 = vadd.f32 %v1384_v33, %v632_v12  ;;  %v836_v10 = vmul.f32 %v1159_v13, %v1374_v15  ;;  %v534_v32 = vadd.f32 %v1351_v39, %v264_v5 }
 0x112   :  { %v1161_v20 = vpop.eup %1160  ;;  %v268_v22 = vpop.f32.mrb[26].mxu0  ;;  %v596_v38 = vrot.slane %v266_v16, 1 }
 0x113   :  { %v270_v24 = vpop.f32.mrb[27].mxu0  ;;  %v837_v25 = vmul.f32 %v1161_v20, %v1387_v35  ;;  %1170 = vpow2.f32 %v999_v17  ;;  %v1000_v26 = vmul.f32 -1.442695, %v1452_v18  ;;  %v705_v20 = vsel %vm672_vm2, %v702_v55, %v704_v62 }
 0x114   :  { %1172 = vrcp.f32 %v792_v14  ;;  %v597_v27 = vsel %vm572_vm3, %v594_v61, %v596_v38  ;;  %v598_v28 = vrot.slane %v270_v24, 1 }
 0x115   :  { %v1163_v29 = vpop.eup %1162  ;;  %v1092_v33 = vpack.c.bf16 %v837_v25, %v836_v10  ;;  %v633_v31 = vadd.f32 %v597_v27, %v533_v23  ;;  %1174 = vpow2.f32 %v1000_v26 }
 0x116   :  { %v793_v3 = vadd.f32 1.0, %v1163_v29  ;;  %v599_v34 = vsel %vm572_vm3, %v596_v38, %v598_v28 }
 0x117   :  { %v1165_v36 = vpop.eup %1164  ;;  %v1462_v15 = vadd.f32 %v1405_v58, %v633_v31  ;;  %v634_v35 = vadd.f32 %v599_v34, %v534_v32  ;;  %v535_v58 = vadd.f32 %v1351_v39, %v268_v22 }
 0x118   :  { %v1167_v42 = vpop.eup %1166  ;;  %v274_v43 = vpop.f32.mrb[28].mxu0  ;;  %1093 = vmatpush3.bf16.xpose.msra.mxu0 %v1092_v33  ;;  %1176 = vrcp.f32 %v793_v3  ;;  %v794_v53 = vadd.f32 1.0, %v1165_v36 }
 0x119   :  { %v276_v44 = vpop.f32.mrb[29].mxu0  ;;  %1094 = vmatprep.subr.bf16.mxu0 %v1229_v21  ;;  %v1001_v46 = vmul.f32 -1.442695, %v1462_v15  ;;  %v1467_v49 = vadd.f32 %v1415_v6, %v634_v35  ;;  %v838_v57 = vmul.f32 %v1167_v42, %v1396_v45  ;;  %v536_v6 = vadd.f32 %v1351_v39, %v274_v43 }
 0x11a   :  { %v1169_v51 = vpop.eup %1168  ;;  %v278_v52 = vpop.f32.mrb[30].mxu0  ;;  %v600_v54 = vrot.slane %v276_v44, 1 }
 0x11b   :  { %v280_v30 = vpop.f32.mrb[31].mxu0  ;;  %v839_v59 = vmul.f32 %v1169_v51, %v1421_v11  ;;  %1178 = vpow2.f32 %v1001_v46  ;;  %v1002_v60 = vmul.f32 -1.442695, %v1467_v49  ;;  %v537_v4 = vadd.f32 %v1351_v39, %v278_v52 }
 0x11c   :  { %v601_v61 = vsel %vm572_vm3, %v598_v28, %v600_v54  ;;  %v602_v37 = vrot.slane %v280_v30, 1 }
 0x11d   :  { %v1171_v0 = vpop.eup %1170  ;;  %v1095_v1 = vpack.c.bf16 %v839_v59, %v838_v57  ;;  %v635_v2 = vadd.f32 %v601_v61, %v535_v58  ;;  %1180 = vpow2.f32 %v1002_v60 }
 0x11e   :  { %v1173_v8 = vpop.eup %1172  ;;  %v795_v12 = vadd.f32 1.0, %v1171_v0  ;;  %1182 = vrcp.f32 %v794_v53  ;;  %v603_v45 = vsel %vm572_vm3, %v600_v54, %v602_v37  ;;  %v605_v11 = vsel %vm572_vm3, %v602_v37, %v604_v56 }
 0x11f   :  { %v1175_v13 = vpop.eup %1174  ;;  %v735_v5 = vadd.f32 %v1418_v7, %v635_v2  ;;  %v636_v14 = vadd.f32 %v603_v45, %v536_v6  ;;  %v637_v16 = vadd.f32 %v605_v11, %v537_v4  ;;  %v840_v24 = vmul.f32 %v1173_v8, %v1425_v19 }
 0x120   :  { %1096 = vmatpush3.bf16.xpose.msra.mxu0 %v1095_v1  ;;  %1184 = vrcp.f32 %v795_v12  ;;  %v796_v17 = vadd.f32 1.0, %v1175_v13 }
 0x121   :  { %1097 = vmatprep.subr.bf16.mxu0 %v1229_v21  ;;  %v1003_v39 = vmul.f32 -1.442695, %v735_v5  ;;  %v736_v22 = vadd.f32 %v1411_v63, %v636_v14  ;;  %v737_v23 = vadd.f32 %v705_v20, %v637_v16 }
 0x122   :  { %v1177_v38 = vpop.eup %1176 }
 0x123   :  { %v841_v7 = vmul.f32 %v1177_v38, %v1433_v41  ;;  %1186 = vpow2.f32 %v1003_v39  ;;  %v1004_v10 = vmul.f32 -1.442695, %v736_v22  ;;  %v1005_v25 = vmul.f32 -1.442695, %v737_v23 }
 0x124   :  { %1188 = vrcp.f32 %v796_v17 }
 0x125   :  { %v1179_v26 = vpop.eup %1178  ;;  %v1098_v27 = vpack.c.bf16 %v841_v7, %v840_v24  ;;  %1190 = vpow2.f32 %v1004_v10 }
 0x126   :  { %v797_v48 = vadd.f32 1.0, %v1179_v26  ;;  %1192 = vpow2.f32 %v1005_v25 }
 0x127   :  { %v1181_v55 = vpop.eup %1180 }
 0x128   :  { %v1183_v28 = vpop.eup %1182  ;;  %1099 = vmatpush3.bf16.xpose.msra.mxu0 %v1098_v27  ;;  %1194 = vrcp.f32 %v797_v48  ;;  %v798_v29 = vadd.f32 1.0, %v1181_v55 }
 0x129   :  { %1100 = vmatprep.subr.bf16.mxu0 %v1229_v21  ;;  %v842_v19 = vmul.f32 %v1183_v28, %v1437_v47 }
 0x12a   :  { %v1185_v63 = vpop.eup %1184  ;;  %1196 = vrcp.f32 %v798_v29 }
 0x12b   :  { %v843_v41 = vmul.f32 %v1185_v63, %v1447_v9 }
 0x12d   :  { %v1187_v33 = vpop.eup %1186  ;;  %v1101_v31 = vpack.c.bf16 %v843_v41, %v842_v19 }
 0x12e   :  { %v1189_v32 = vpop.eup %1188  ;;  %v799_v3 = vadd.f32 1.0, %v1187_v33 }
 0x12f   :  { %v1191_v34 = vpop.eup %1190  ;;  %v844_v43 = vmul.f32 %v1189_v32, %v1452_v18  ;;  %v850_v18 = vld [vmem:[%s1514_s4] sm:$0xff] }
 0x130   :  { %v1193_v36 = vpop.eup %1192  ;;  %1102 = vmatpush3.bf16.xpose.msra.mxu0 %v1101_v31  ;;  %1198 = vrcp.f32 %v799_v3  ;;  %v800_v35 = vadd.f32 1.0, %v1191_v34 }
 0x131   :  { %1103 = vmatprep.subr.bf16.mxu0 %v1229_v21  ;;  %v801_v40 = vadd.f32 1.0, %v1193_v36 }
 0x132   :  { %v1195_v42 = vpop.eup %1194  ;;  %1200 = vrcp.f32 %v800_v35 }
 0x133   :  { %v845_v47 = vmul.f32 %v1195_v42, %v1462_v15  ;;  %1202 = vrcp.f32 %v801_v40  ;;  %v927_v15 = vlaneseq }
 0x134   :  { %v1197_v44 = vpop.eup %1196 }
 0x135   :  { %v1104_v9 = vpack.c.bf16 %v845_v47, %v844_v43  ;;  %v846_v50 = vmul.f32 %v1197_v44, %v1467_v49  ;;  %v928_v57 = vshrl.u32 %v927_v15, 7  ;;  %v925_v49 = vpop.permute.xlu0 %924 }
 0x137   :  { %v929_v59 = vsub.s32 0, %v928_v57 }
 0x138   :  { %1105 = vmatpush3.bf16.xpose.msra.mxu0 %v1104_v9 }
 0x139   :  { %1106 = vmatprep.subr.bf16.mxu0 %v1229_v21  ;;  %v930_v60 = vrot.slane %v925_v49, %v929_v59 }
 0x13a   :  { %v1199_v46 = vpop.eup %1198 }
 0x13b   :  { %v847_v51 = vmul.f32 %v1199_v46, %v735_v5 }
 0x13c   :  { %v1201_v52 = vpop.eup %1200 }
 0x13d   :  { %v1203_v53 = vpop.eup %1202  ;;  %v1107_v58 = vpack.c.bf16 %v847_v51, %v846_v50  ;;  %v848_v54 = vmul.f32 %v1201_v52, %v736_v22 }
 0x13e   :  { %v849_v56 = vmul.f32 %v1203_v53, %v737_v23 }
 0x140   :  { %1108 = vmatpush3.bf16.xpose.msra.mxu0 %v1107_v58  ;;  %v1110_v30 = vpack.c.bf16 %v849_v56, %v848_v54 }
 0x141   :  { %1109 = vmatprep.subr.bf16.mxu0 %v1229_v21 }
 0x148   :  { %1111 = vmatpush3.bf16.xpose.msra.mxu0 %v1110_v30 }
 0x14f   :  { %1086 = vmatmul.mubr.f32.vlgmr.msra.gmra.mrb[32].mxu0 %v850_v18 }
 0x222   :  { %v917_v61 = vpop.f32.mrb[32].mxu0 }
 0x223   :  { %v931_v6 = vadd.f32 %v930_v60, %v917_v61  ;;  %v1087_v37 = vpop.f32.mrb[33].mxu0 }
 0x225   :  { %932 = vst [vmem:[#allocation4] sm:$0x1] %v931_v6 }
 0x226   :  { %1215 = shalt.err (!%p1212_p4)
}
 0x227   :  { %s1216_s16 = scalar_lea.hbm %s1516_s6, 16 }
 0x228   :  { %p1217_p5 = scmp.ne.s32.totalorder %s1516_s6, %s1216_s16  ;;  %p1220_p6 = scmp.lt.u32.totalorder %s1216_s16, %s1516_s6 }
 0x22a   :  { %p1222_p7 = pnand %p1220_p6, %p1217_p5 }
 0x22c   :  { %1225 = shalt.err (!%p1222_p7)
}
 0x22d   :  { %942 = dma.vmem_to_hbm [thread:$0]  %s940_s12, 16, %s1516_s6, [#allocation5]  }
 0x22e   :  { %1226 = dma.done.wait [#allocation5], 16  }
 0x22f   :  { %1227 = vsyncadd [#allocation5], 4294967280 }
 0x230   :  { %946 = vsyncpa [#allocation5], 1 }

// kernel: tpu_custom_call.1
= control target key start
LH: loop header
LB: loop body
LE: loop exit
PB: predicated region body
PF: predicated region fallthrough
CT: control target
= control target key end

     0   :  { %s1510_s0 = inlined_call_operand.vmem [shape: bf16[136,32], index: 0, kind: input, shape index: {}]   ;;  %s1511_s1 = inlined_call_operand.vmem [shape: bf16[136,32], index: 1, kind: input, shape index: {}]   ;;  %s1512_s2 = inlined_call_operand.vmem [shape: bf16[32,384], index: 2, kind: input, shape index: {}]   ;;  %s1513_s3 = inlined_call_operand.vmem [shape: f32[1,128], index: 3, kind: input, shape index: {}]   ;;  %s1514_s4 = inlined_call_operand.vmem [shape: f32[8,128], index: 4, kind: input, shape index: {}]   ;;  %s1515_s5 = inlined_call_operand.<no memory space> [shape: f32[1,1], index: 5, kind: input, shape index: {}]   ;;  %s1516_s6 = inlined_call_operand.hbm [shape: f32[1,1,128], index: 6, kind: output, shape index: {}]  }
   0x1   :  { %v11_v0 = vstv %s1515_s5 }
   0x2   :  { %12 = vst [vmem:[#allocation3] sm:$0x1] %v11_v0 }
   0x3   :  { %v1118_v1 = vld [vmem:[%s1512_s2 + $0x4] ss:$12 sps:$4 sm:$0xff]   ;;  %v1120_v2 = vld [vmem:[%s1512_s2 + $0x8] ss:$12 sps:$4 sm:$0xff]   ;;  %v1228_v3 = vmov 0   ;;  %vm145_vm0 = vcmask 261120  }
   0x4   :  { %202 = vmatprep.mubr.bf16.mxu0 %v1228_v3  ;;  %1117 = vset.pattern.permute.xlu0 %v1228_v3  ;;  %v1121_v4 = vld [vmem:[%s1512_s2] ss:$12 sps:$4 sm:$0xff]   ;;  %v1122_v5 = vld [vmem:[%s1512_s2 + $0x1c] ss:$12 sps:$4 sm:$0xff]   ;;  %v1125_v7 = vld [vmem:[%s1512_s2 + $0x18] ss:$12 sps:$4 sm:$0xff]  }
   0x5   :  { %170 = vmatprep.subr.bf16.mxu0 %v1118_v1  ;;  %1033 = vmatprep.subr.bf16.mxu1 %v1120_v2  ;;  %v1124_v6 = vld [vmem:[%s1512_s2 + $0x20] ss:$12 sps:$4 sm:$0xff]   ;;  %v1128_v10 = vld [vmem:[%s1510_s0 + $0x10] sm:$0xff]   ;;  %v1129_v13 = vld [vmem:[%s1510_s0 + $0x18] sm:$0xff]  }
   0x6   :  { %171 = vmatpush1.bf16.msra.mxu0 %v1121_v4  ;;  %1034 = vmatpush3.bf16.msra.mxu1 %v1120_v2  ;;  %v1126_v8 = vld [vmem:[%s1510_s0] sm:$0xff]   ;;  %v1127_v9 = vld [vmem:[%s1510_s0 + $0x8] sm:$0xff]  }
   0x7   :  { %172 = vmatprep.subr.bf16.mxu0 %v1122_v5  ;;  %1035 = vmatprep.subr.bf16.mxu1 %v1124_v6  ;;  %v1134_v11 = vld [vmem:[%s1512_s2 + $0x4] ss:$12 sps:$4 sm:$0xff]   ;;  %v1136_v12 = vld [vmem:[%s1512_s2 + $0x8] ss:$12 sps:$4 sm:$0xff]   ;;  %v1139_v14 = vld [vmem:[%s1512_s2 + $0x20] ss:$12 sps:$4 sm:$0xff]  }
   0x8   :  { %1037 = vmatprep.mubr.msk.bf16.mxu1 %vm145_vm0, %v1126_v8 }
   0xa   :  { %173 = vmatpush1.bf16.msra.mxu0 %v1125_v7  ;;  %1036 = vmatpush3.bf16.msra.mxu1 %v1124_v6 }
   0xb   :  { %456 = vmatprep.subr.bf16.mxu1 %v1136_v12 }
   0xd   :  { %967 = vmatmul.mubr.msk.bf16.vlgmr.msra.gmra.mrb[0].mxu0 %vm145_vm0, %v1126_v8  ;;  %1038 = vmatmul.mubr.msk.bf16.vlgmr.msra.gmra.mrb[0].mxu1 %vm145_vm0, %v1127_v9 }
   0xe   :  { %212 = vmatprep.mubr.bf16.mxu0 %v1228_v3  ;;  %1041 = vmatprep.mubr.msk.bf16.mxu1 %vm145_vm0, %v1128_v10 }
   0xf   :  { %13 = vsyncpa [#allocation5], 0  ;;  %v1130_v15 = vld [vmem:[%s1510_s0 + $0x20] sm:$0xff]   ;;  %457 = vmatpush1.bf16.msra.mxu1 %v1134_v11  ;;  %v1137_v16 = vld [vmem:[%s1512_s2 + $0x1c] ss:$12 sps:$4 sm:$0xff]   ;;  %v1229_v21 = vmov 0.0|0.0  }
  0x10   :  { %458 = vmatprep.subr.bf16.mxu1 %v1139_v14  ;;  %v1131_v17 = vld [vmem:[%s1510_s0 + $0x28] sm:$0xff]   ;;  %v1132_v18 = vld [vmem:[%s1510_s0 + $0x30] sm:$0xff]   ;;  %v1133_v19 = vld [vmem:[%s1510_s0 + $0x38] sm:$0xff]   ;;  %1088 = vmatprep.subr.bf16.mxu0 %v1229_v21  ;;  %vm1230_vm1 = vmmov 0   ;;  %v1231_v22 = vmov 0.0   ;;  %vm672_vm2 = vcmask 1045504  }
  0x11   :  { %v983_v20 = vld [vmem:[%s1511_s1 + $0x40] sm:$0xf]  ;;  %v921_v23 = vld [vmem:[#allocation3] sm:$0x1]  ;;  %vm572_vm3 = vcmask 1046528   ;;  %s1232_s11 = smov [#allocation4]  }
  0x12   :  { %924 = vperm.xlu0 %1117, %v921_v23   ;;  %v1351_v39 = vld [vmem:[%s1513_s3] ss:$0 sm:$0xff]  ;;  %s939_s12 = sshll.u32 %s1232_s11, 4  ;;  %s940_s12 = int_to_ptr.vmem [resolvable:$true] %s939_s12 }
  0x13   :  { %459 = vmatpush1.bf16.msra.mxu1 %v1137_v16  ;;  %s1204_s13 = scalar_lea.vmem %s940_s12, 16  ;;  %s1208_s14 = scalar_lea.vmem %s940_s12, 32 }
  0x14   :  { %p1205_p0 = scmp.ne.s32.totalorder %s940_s12, %s1204_s13  ;;  %p1209_p1 = scmp.lt.s32.totalorder %s940_s12, %s940_s12 }
  0x15   :  { %968 = vmatmul.mubr.msk.bf16.gmra.mrb[4].mxu0 %vm145_vm0, %v1127_v9  ;;  %1042 = vmatmul.mubr.msk.bf16.gmra.mrb[4].mxu1 %vm145_vm0, %v1129_v13  ;;  %p1210_p2 = scmp.lt.s32.totalorder %s1208_s14, %s1204_s13 }
  0x16   :  { %222 = vmatprep.mubr.bf16.mxu0 %v1228_v3  ;;  %1045 = vmatprep.mubr.msk.bf16.mxu1 %vm145_vm0, %v1130_v15 }
  0x17   :  { %p1211_p3 = por %p1210_p2, %p1209_p1 }
  0x19   :  { %p1212_p4 = pnand %p1211_p3, %p1205_p0 }
  0x1d   :  { %969 = vmatmul.mubr.msk.bf16.gmra.mrb[8].mxu0 %vm145_vm0, %v1128_v10  ;;  %1046 = vmatmul.mubr.msk.bf16.gmra.mrb[8].mxu1 %vm145_vm0, %v1131_v17 }
  0x1e   :  { %232 = vmatprep.mubr.bf16.mxu0 %v1228_v3  ;;  %1049 = vmatprep.mubr.msk.bf16.mxu1 %vm145_vm0, %v1132_v18 }
  0x25   :  { %970 = vmatmul.mubr.msk.bf16.gmra.mrb[12].mxu0 %vm145_vm0, %v1129_v13  ;;  %1050 = vmatmul.mubr.msk.bf16.gmra.mrb[12].mxu1 %vm145_vm0, %v1133_v19 }
  0x26   :  { %242 = vmatprep.mubr.bf16.mxu0 %v1228_v3  ;;  %488 = vmatprep.mubr.bf16.mxu1 %v1228_v3 }
  0x2d   :  { %971 = vmatmul.mubr.msk.bf16.gmra.mrb[16].mxu0 %vm145_vm0, %v1130_v15  ;;  %988 = vmatmul.mubr.msk.bf16.vlgmr.msra.gmra.mrb[16].mxu1 %vm145_vm0, %v983_v20 }
  0x2e   :  { %252 = vmatprep.mubr.bf16.mxu0 %v1228_v3 }
  0x35   :  { %972 = vmatmul.mubr.msk.bf16.gmra.mrb[20].mxu0 %vm145_vm0, %v1131_v17 }
  0x36   :  { %262 = vmatprep.mubr.bf16.mxu0 %v1228_v3 }
  0x3d   :  { %973 = vmatmul.mubr.msk.bf16.gmra.mrb[24].mxu0 %vm145_vm0, %v1132_v18 }
  0x3e   :  { %272 = vmatprep.mubr.bf16.mxu0 %v1228_v3 }
  0x45   :  { %974 = vmatmul.mubr.msk.bf16.gmra.mrb[28].mxu0 %vm145_vm0, %v1133_v19 }
  0x46   :  { %1085 = vmatprep.mubr.msk.f32.mxu0 %vm1230_vm1, %v1231_v22 }
  0xe0   :  { %v204_v24 = vpop.f32.mrb[0].mxu0  ;;  %v1039_v25 = vpop.f32.mrb[0].mxu1 }
  0xe1   :  { %v206_v26 = vpop.f32.mrb[1].mxu0  ;;  %v317_v27 = vpop.f32.mrb[1].mxu1  ;;  %v676_v28 = vrot.slane %v1039_v25, 2  ;;  %v522_v53 = vadd.f32 %v1351_v39, %v204_v24 }
  0xe2   :  { %381 = vst [vmem:[#allocation2 + $0x8] sm:$0xff] %v206_v26  ;;  %v208_v29 = vpop.f32.mrb[2].mxu0  ;;  %382 = vst [vmem:[#allocation2 + $0x10] sm:$0xff] %v317_v27  ;;  %v1040_v30 = vpop.f32.mrb[2].mxu1 }
  0xe3   :  { %v210_v31 = vpop.f32.mrb[3].mxu0  ;;  %v320_v32 = vpop.f32.mrb[3].mxu1  ;;  %v678_v33 = vrot.slane %v1040_v30, 2  ;;  %v523_v54 = vadd.f32 %v1351_v39, %v208_v29 }
  0xe4   :  { %v674_v34 = vrot.slane %v320_v32, 2  ;;  %v574_v40 = vrot.slane %v210_v31, 1 }
  0xe5   :  { %v679_v35 = vsel %vm672_vm2, %v676_v28, %v678_v33 }
  0xe6   :  { %v677_v36 = vsel %vm672_vm2, %v674_v34, %v676_v28 }
  0xe8   :  { %v214_v37 = vpop.f32.mrb[4].mxu0  ;;  %v1043_v38 = vpop.f32.mrb[4].mxu1 }
  0xe9   :  { %v216_v41 = vpop.f32.mrb[5].mxu0  ;;  %v333_v42 = vpop.f32.mrb[5].mxu1  ;;  %v538_v43 = vld [vmem:[#allocation2 + $0x8] sm:$0xfe]  ;;  %v638_v44 = vld [vmem:[#allocation2 + $0x10] sm:$0xfc]  ;;  %v524_v59 = vadd.f32 %v1351_v39, %v214_v37 }
  0xea   :  { %v218_v45 = vpop.f32.mrb[6].mxu0  ;;  %v1044_v46 = vpop.f32.mrb[6].mxu1  ;;  %v573_v47 = vrot.slane %v538_v43, 1  ;;  %v576_v48 = vrot.slane %v216_v41, 1  ;;  %v673_v49 = vrot.slane %v638_v44, 2  ;;  %v680_v50 = vrot.slane %v333_v42, 2 }
  0xeb   :  { %v220_v51 = vpop.f32.mrb[7].mxu0  ;;  %v336_v52 = vpop.f32.mrb[7].mxu1  ;;  %v684_v55 = vrot.slane %v1043_v38, 2  ;;  %v686_v56 = vrot.slane %v1044_v46, 2  ;;  %v525_v18 = vadd.f32 %v1351_v39, %v218_v45 }
  0xec   :  { %v575_v57 = vsel %vm572_vm3, %v573_v47, %v574_v40  ;;  %v577_v58 = vsel %vm572_vm3, %v574_v40, %v576_v48  ;;  %v578_v60 = vrot.slane %v220_v51, 1  ;;  %v681_v63 = vsel %vm672_vm2, %v678_v33, %v680_v50 }
  0xed   :  { %v622_v61 = vadd.f32 %v575_v57, %v522_v53  ;;  %v623_v62 = vadd.f32 %v577_v58, %v523_v54  ;;  %v682_v0 = vrot.slane %v336_v52, 2  ;;  %v675_v1 = vsel %vm672_vm2, %v673_v49, %v674_v34 }
  0xee   :  { %v579_v2 = vsel %vm572_vm3, %v576_v48, %v578_v60  ;;  %v1362_v3 = vsel %vm672_vm2, %v684_v55, %v686_v56 }
  0xef   :  { %v1364_v4 = vadd.f32 %v675_v1, %v622_v61  ;;  %v1366_v5 = vadd.f32 %v677_v36, %v623_v62  ;;  %v624_v6 = vadd.f32 %v579_v2, %v524_v59  ;;  %v683_v7 = vsel %vm672_vm2, %v680_v50, %v682_v0 }
  0xf0   :  { %v224_v8 = vpop.f32.mrb[8].mxu0  ;;  %v1047_v9 = vpop.f32.mrb[8].mxu1  ;;  %v1370_v10 = vsel %vm672_vm2, %v682_v0, %v684_v55 }
  0xf1   :  { %v226_v11 = vpop.f32.mrb[9].mxu0  ;;  %v349_v12 = vpop.f32.mrb[9].mxu1  ;;  %v990_v13 = vmul.f32 -1.442695, %v1364_v4  ;;  %v991_v14 = vmul.f32 -1.442695, %v1366_v5  ;;  %v1374_v15 = vadd.f32 %v679_v35, %v624_v6  ;;  %v526_v26 = vadd.f32 %v1351_v39, %v224_v8 }
  0xf2   :  { %v228_v16 = vpop.f32.mrb[10].mxu0  ;;  %v1048_v17 = vpop.f32.mrb[10].mxu1  ;;  %v580_v19 = vrot.slane %v226_v11, 1  ;;  %v688_v20 = vrot.slane %v349_v12, 2  ;;  %v692_v22 = vrot.slane %v1047_v9, 2 }
  0xf3   :  { %v230_v23 = vpop.f32.mrb[11].mxu0  ;;  %v352_v24 = vpop.f32.mrb[11].mxu1  ;;  %1140 = vpow2.f32 %v990_v13  ;;  %v992_v25 = vmul.f32 -1.442695, %v1374_v15  ;;  %v694_v27 = vrot.slane %v1048_v17, 2  ;;  %v527_v53 = vadd.f32 %v1351_v39, %v228_v16 }
  0xf4   :  { %1142 = vpow2.f32 %v991_v14  ;;  %v581_v28 = vsel %vm572_vm3, %v578_v60, %v580_v19  ;;  %v582_v29 = vrot.slane %v230_v23, 1  ;;  %v1381_v30 = vsel %vm672_vm2, %v686_v56, %v688_v20 }
  0xf5   :  { %v625_v31 = vadd.f32 %v581_v28, %v525_v18  ;;  %1144 = vpow2.f32 %v992_v25  ;;  %v690_v32 = vrot.slane %v352_v24, 2  ;;  %v1384_v33 = vsel %vm672_vm2, %v692_v22, %v694_v27 }
  0xf6   :  { %v583_v34 = vsel %vm572_vm3, %v580_v19, %v582_v29 }
  0xf7   :  { %v1387_v35 = vadd.f32 %v681_v63, %v625_v31  ;;  %v626_v36 = vadd.f32 %v583_v34, %v526_v26  ;;  %v1390_v37 = vsel %vm672_vm2, %v688_v20, %v690_v32  ;;  %v1393_v38 = vsel %vm672_vm2, %v690_v32, %v692_v22 }
  0xf8   :  { %v234_v40 = vpop.f32.mrb[12].mxu0  ;;  %v1051_v41 = vpop.f32.mrb[12].mxu1 }
  0xf9   :  { %v236_v42 = vpop.f32.mrb[13].mxu0  ;;  %v365_v43 = vpop.f32.mrb[13].mxu1  ;;  %v993_v44 = vmul.f32 -1.442695, %v1387_v35  ;;  %v1396_v45 = vadd.f32 %v683_v7, %v626_v36  ;;  %v700_v46 = vrot.slane %v1051_v41, 2  ;;  %v528_v62 = vadd.f32 %v1351_v39, %v234_v40 }
  0xfa   :  { %v238_v47 = vpop.f32.mrb[14].mxu0  ;;  %v1398_v48 = vpop.f32.mrb[14].mxu1  ;;  %v584_v49 = vrot.slane %v236_v42, 1  ;;  %v696_v50 = vrot.slane %v365_v43, 2 }
  0xfb   :  { %v240_v51 = vpop.f32.mrb[15].mxu0  ;;  %v368_v52 = vpop.f32.mrb[15].mxu1  ;;  %1146 = vpow2.f32 %v993_v44  ;;  %v994_v54 = vmul.f32 -1.442695, %v1396_v45  ;;  %v702_v55 = vrot.slane %v1398_v48, 2  ;;  %v529_v26 = vadd.f32 %v1351_v39, %v238_v47 }
  0xfc   :  { %v585_v56 = vsel %vm572_vm3, %v582_v29, %v584_v49  ;;  %v586_v57 = vrot.slane %v240_v51, 1  ;;  %v1405_v58 = vsel %vm672_vm2, %v694_v27, %v696_v50  ;;  %v698_v59 = vrot.slane %v368_v52, 2 }
  0xfd   :  { %v1141_v60 = vpop.eup %1140  ;;  %v627_v61 = vadd.f32 %v585_v56, %v527_v53  ;;  %1148 = vpow2.f32 %v994_v54  ;;  %v1411_v63 = vsel %vm672_vm2, %v700_v46, %v702_v55 }
  0xfe   :  { %v1143_v0 = vpop.eup %1142  ;;  %v786_v1 = vadd.f32 1.0, %v1141_v60  ;;  %v587_v2 = vsel %vm572_vm3, %v584_v49, %v586_v57  ;;  %v1415_v6 = vsel %vm672_vm2, %v696_v50, %v698_v59  ;;  %v1418_v7 = vsel %vm672_vm2, %v698_v59, %v700_v46 }
  0xff   :  { %v1145_v8 = vpop.eup %1144  ;;  %v787_v9 = vadd.f32 1.0, %v1143_v0  ;;  %v1421_v11 = vadd.f32 %v1370_v10, %v627_v61  ;;  %v628_v12 = vadd.f32 %v587_v2, %v528_v62 }
 0x100   :  { %v244_v13 = vpop.f32.mrb[16].mxu0  ;;  %v490_v14 = vpop.f32.mrb[16].mxu1  ;;  %1150 = vrcp.f32 %v786_v1  ;;  %v788_v22 = vadd.f32 1.0, %v1145_v8 }
 0x101   :  { %v246_v16 = vpop.f32.mrb[17].mxu0  ;;  %497 = vst [vmem:[#allocation2 + $0x188] sm:$0xff] %v490_v14  ;;  %v492_v17 = vpop.f32.mrb[17].mxu1  ;;  %1152 = vrcp.f32 %v787_v9  ;;  %v995_v18 = vmul.f32 -1.442695, %v1421_v11  ;;  %v1425_v19 = vadd.f32 %v1362_v3, %v628_v12  ;;  %v530_v3 = vadd.f32 %v1351_v39, %v244_v13 }
 0x102   :  { %v248_v20 = vpop.f32.mrb[18].mxu0  ;;  %498 = vst [vmem:[#allocation2 + $0x190] sm:$0xff] %v492_v17  ;;  %v494_v23 = vpop.f32.mrb[18].mxu1  ;;  %v588_v24 = vrot.slane %v246_v16, 1 }
 0x103   :  { %v250_v10 = vpop.f32.mrb[19].mxu0  ;;  %v495_v25 = vpop.f32.mrb[19].mxu1  ;;  %1154 = vpow2.f32 %v995_v18  ;;  %v996_v27 = vmul.f32 -1.442695, %v1425_v19 }
 0x104   :  { %v589_v28 = vsel %vm572_vm3, %v586_v57, %v588_v24  ;;  %v590_v29 = vrot.slane %v250_v10, 1 }
 0x105   :  { %v1147_v31 = vpop.eup %1146  ;;  %v629_v32 = vadd.f32 %v589_v28, %v529_v26  ;;  %1156 = vpow2.f32 %v996_v27 }
 0x106   :  { %v789_v34 = vadd.f32 1.0, %v1147_v31  ;;  %1158 = vrcp.f32 %v788_v22  ;;  %v591_v36 = vsel %vm572_vm3, %v588_v24, %v590_v29 }
 0x107   :  { %v1149_v40 = vpop.eup %1148  ;;  %v1433_v41 = vadd.f32 %v1381_v30, %v629_v32  ;;  %v630_v42 = vadd.f32 %v591_v36, %v530_v3  ;;  %v531_v30 = vadd.f32 %v1351_v39, %v248_v20 }
 0x108   :  { %v254_v43 = vpop.f32.mrb[20].mxu0  ;;  %1160 = vrcp.f32 %v789_v34  ;;  %v790_v51 = vadd.f32 1.0, %v1149_v40  ;;  %v554_v40 = vld [vmem:[#allocation2 + $0x188] sm:$0x1] }
 0x109   :  { %v256_v44 = vpop.f32.mrb[21].mxu0  ;;  %v997_v46 = vmul.f32 -1.442695, %v1433_v41  ;;  %v1437_v47 = vadd.f32 %v1390_v37, %v630_v42  ;;  %v532_v0 = vadd.f32 %v1351_v39, %v254_v43 }
 0x10a   :  { %v1151_v49 = vpop.eup %1150  ;;  %v258_v50 = vpop.f32.mrb[22].mxu0  ;;  %v592_v52 = vrot.slane %v256_v44, 1 }
 0x10b   :  { %v1153_v53 = vpop.eup %1152  ;;  %v260_v54 = vpop.f32.mrb[23].mxu0  ;;  %v834_v56 = vmul.f32 %v1151_v49, %v1364_v4  ;;  %1162 = vpow2.f32 %v997_v46  ;;  %v998_v57 = vmul.f32 -1.442695, %v1437_v47  ;;  %v533_v23 = vadd.f32 %v1351_v39, %v258_v50  ;;  %v654_v50 = vld [vmem:[#allocation2 + $0x190] sm:$0x3] }
 0x10c   :  { %v835_v59 = vmul.f32 %v1153_v53, %v1366_v5  ;;  %v593_v60 = vsel %vm572_vm3, %v590_v29, %v592_v52  ;;  %v594_v61 = vrot.slane %v260_v54, 1 }
 0x10d   :  { %v1155_v37 = vpop.eup %1154  ;;  %v631_v62 = vadd.f32 %v593_v60, %v531_v30  ;;  %1164 = vpow2.f32 %v998_v57 }
 0x10e   :  { %v1089_v1 = vpack.c.bf16 %v835_v59, %v834_v56  ;;  %v791_v2 = vadd.f32 1.0, %v1155_v37  ;;  %1166 = vrcp.f32 %v790_v51  ;;  %v595_v4 = vsel %vm572_vm3, %v592_v52, %v594_v61 }
 0x10f   :  { %v1157_v8 = vpop.eup %1156  ;;  %v1447_v9 = vadd.f32 %v1393_v38, %v631_v62  ;;  %v632_v12 = vadd.f32 %v595_v4, %v532_v0  ;;  %v604_v56 = vrot.slane %v554_v40, 1  ;;  %v704_v62 = vrot.slane %v654_v50, 2 }
 0x110   :  { %v1159_v13 = vpop.eup %1158  ;;  %v264_v5 = vpop.f32.mrb[24].mxu0  ;;  %1090 = vmatpush3.bf16.xpose.msra.mxu0 %v1089_v1  ;;  %1168 = vrcp.f32 %v791_v2  ;;  %v792_v14 = vadd.f32 1.0, %v1157_v8 }
 0x111   :  { %v266_v16 = vpop.f32.mrb[25].mxu0  ;;  %1091 = vmatprep.subr.bf16.mxu0 %v1229_v21  ;;  %v999_v17 = vmul.f32 -1.442695, %v1447_v9  ;;  %v1452_v18 = vadd.f32 %v1384_v33, %v632_v12  ;;  %v836_v10 = vmul.f32 %v1159_v13, %v1374_v15  ;;  %v534_v32 = vadd.f32 %v1351_v39, %v264_v5 }
 0x112   :  { %v1161_v20 = vpop.eup %1160  ;;  %v268_v22 = vpop.f32.mrb[26].mxu0  ;;  %v596_v38 = vrot.slane %v266_v16, 1 }
 0x113   :  { %v270_v24 = vpop.f32.mrb[27].mxu0  ;;  %v837_v25 = vmul.f32 %v1161_v20, %v1387_v35  ;;  %1170 = vpow2.f32 %v999_v17  ;;  %v1000_v26 = vmul.f32 -1.442695, %v1452_v18  ;;  %v705_v20 = vsel %vm672_vm2, %v702_v55, %v704_v62 }
 0x114   :  { %1172 = vrcp.f32 %v792_v14  ;;  %v597_v27 = vsel %vm572_vm3, %v594_v61, %v596_v38  ;;  %v598_v28 = vrot.slane %v270_v24, 1 }
 0x115   :  { %v1163_v29 = vpop.eup %1162  ;;  %v1092_v33 = vpack.c.bf16 %v837_v25, %v836_v10  ;;  %v633_v31 = vadd.f32 %v597_v27, %v533_v23  ;;  %1174 = vpow2.f32 %v1000_v26 }
 0x116   :  { %v793_v3 = vadd.f32 1.0, %v1163_v29  ;;  %v599_v34 = vsel %vm572_vm3, %v596_v38, %v598_v28 }
 0x117   :  { %v1165_v36 = vpop.eup %1164  ;;  %v1462_v15 = vadd.f32 %v1405_v58, %v633_v31  ;;  %v634_v35 = vadd.f32 %v599_v34, %v534_v32  ;;  %v535_v58 = vadd.f32 %v1351_v39, %v268_v22 }
 0x118   :  { %v1167_v42 = vpop.eup %1166  ;;  %v274_v43 = vpop.f32.mrb[28].mxu0  ;;  %1093 = vmatpush3.bf16.xpose.msra.mxu0 %v1092_v33  ;;  %1176 = vrcp.f32 %v793_v3  ;;  %v794_v53 = vadd.f32 1.0, %v1165_v36 }
 0x119   :  { %v276_v44 = vpop.f32.mrb[29].mxu0  ;;  %1094 = vmatprep.subr.bf16.mxu0 %v1229_v21  ;;  %v1001_v46 = vmul.f32 -1.442695, %v1462_v15  ;;  %v1467_v49 = vadd.f32 %v1415_v6, %v634_v35  ;;  %v838_v57 = vmul.f32 %v1167_v42, %v1396_v45  ;;  %v536_v6 = vadd.f32 %v1351_v39, %v274_v43 }
 0x11a   :  { %v1169_v51 = vpop.eup %1168  ;;  %v278_v52 = vpop.f32.mrb[30].mxu0  ;;  %v600_v54 = vrot.slane %v276_v44, 1 }
 0x11b   :  { %v280_v30 = vpop.f32.mrb[31].mxu0  ;;  %v839_v59 = vmul.f32 %v1169_v51, %v1421_v11  ;;  %1178 = vpow2.f32 %v1001_v46  ;;  %v1002_v60 = vmul.f32 -1.442695, %v1467_v49  ;;  %v537_v4 = vadd.f32 %v1351_v39, %v278_v52 }
 0x11c   :  { %v601_v61 = vsel %vm572_vm3, %v598_v28, %v600_v54  ;;  %v602_v37 = vrot.slane %v280_v30, 1 }
 0x11d   :  { %v1171_v0 = vpop.eup %1170  ;;  %v1095_v1 = vpack.c.bf16 %v839_v59, %v838_v57  ;;  %v635_v2 = vadd.f32 %v601_v61, %v535_v58  ;;  %1180 = vpow2.f32 %v1002_v60 }
 0x11e   :  { %v1173_v8 = vpop.eup %1172  ;;  %v795_v12 = vadd.f32 1.0, %v1171_v0  ;;  %1182 = vrcp.f32 %v794_v53  ;;  %v603_v45 = vsel %vm572_vm3, %v600_v54, %v602_v37  ;;  %v605_v11 = vsel %vm572_vm3, %v602_v37, %v604_v56 }
 0x11f   :  { %v1175_v13 = vpop.eup %1174  ;;  %v735_v5 = vadd.f32 %v1418_v7, %v635_v2  ;;  %v636_v14 = vadd.f32 %v603_v45, %v536_v6  ;;  %v637_v16 = vadd.f32 %v605_v11, %v537_v4  ;;  %v840_v24 = vmul.f32 %v1173_v8, %v1425_v19 }
 0x120   :  { %1096 = vmatpush3.bf16.xpose.msra.mxu0 %v1095_v1  ;;  %1184 = vrcp.f32 %v795_v12  ;;  %v796_v17 = vadd.f32 1.0, %v1175_v13 }
 0x121   :  { %1097 = vmatprep.subr.bf16.mxu0 %v1229_v21  ;;  %v1003_v39 = vmul.f32 -1.442695, %v735_v5  ;;  %v736_v22 = vadd.f32 %v1411_v63, %v636_v14  ;;  %v737_v23 = vadd.f32 %v705_v20, %v637_v16 }
 0x122   :  { %v1177_v38 = vpop.eup %1176 }
 0x123   :  { %v841_v7 = vmul.f32 %v1177_v38, %v1433_v41  ;;  %1186 = vpow2.f32 %v1003_v39  ;;  %v1004_v10 = vmul.f32 -1.442695, %v736_v22  ;;  %v1005_v25 = vmul.f32 -1.442695, %v737_v23 }
 0x124   :  { %1188 = vrcp.f32 %v796_v17 }
 0x125   :  { %v1179_v26 = vpop.eup %1178  ;;  %v1098_v27 = vpack.c.bf16 %v841_v7, %v840_v24  ;;  %1190 = vpow2.f32 %v1004_v10 }
 0x126   :  { %v797_v48 = vadd.f32 1.0, %v1179_v26  ;;  %1192 = vpow2.f32 %v1005_v25 }
 0x127   :  { %v1181_v55 = vpop.eup %1180 }
 0x128   :  { %v1183_v28 = vpop.eup %1182  ;;  %1099 = vmatpush3.bf16.xpose.msra.mxu0 %v1098_v27  ;;  %1194 = vrcp.f32 %v797_v48  ;;  %v798_v29 = vadd.f32 1.0, %v1181_v55 }
 0x129   :  { %1100 = vmatprep.subr.bf16.mxu0 %v1229_v21  ;;  %v842_v19 = vmul.f32 %v1183_v28, %v1437_v47 }
 0x12a   :  { %v1185_v63 = vpop.eup %1184  ;;  %1196 = vrcp.f32 %v798_v29 }
 0x12b   :  { %v843_v41 = vmul.f32 %v1185_v63, %v1447_v9 }
 0x12d   :  { %v1187_v33 = vpop.eup %1186  ;;  %v1101_v31 = vpack.c.bf16 %v843_v41, %v842_v19 }
 0x12e   :  { %v1189_v32 = vpop.eup %1188  ;;  %v799_v3 = vadd.f32 1.0, %v1187_v33 }
 0x12f   :  { %v1191_v34 = vpop.eup %1190  ;;  %v844_v43 = vmul.f32 %v1189_v32, %v1452_v18  ;;  %v850_v18 = vld [vmem:[%s1514_s4] sm:$0xff] }
 0x130   :  { %v1193_v36 = vpop.eup %1192  ;;  %1102 = vmatpush3.bf16.xpose.msra.mxu0 %v1101_v31  ;;  %1198 = vrcp.f32 %v799_v3  ;;  %v800_v35 = vadd.f32 1.0, %v1191_v34 }
 0x131   :  { %1103 = vmatprep.subr.bf16.mxu0 %v1229_v21  ;;  %v801_v40 = vadd.f32 1.0, %v1193_v36 }
 0x132   :  { %v1195_v42 = vpop.eup %1194  ;;  %1200 = vrcp.f32 %v800_v35 }
 0x133   :  { %v845_v47 = vmul.f32 %v1195_v42, %v1462_v15  ;;  %1202 = vrcp.f32 %v801_v40  ;;  %v927_v15 = vlaneseq }
 0x134   :  { %v1197_v44 = vpop.eup %1196 }
 0x135   :  { %v1104_v9 = vpack.c.bf16 %v845_v47, %v844_v43  ;;  %v846_v50 = vmul.f32 %v1197_v44, %v1467_v49  ;;  %v928_v57 = vshrl.u32 %v927_v15, 7  ;;  %v925_v49 = vpop.permute.xlu0 %924 }
 0x137   :  { %v929_v59 = vsub.s32 0, %v928_v57 }
 0x138   :  { %1105 = vmatpush3.bf16.xpose.msra.mxu0 %v1104_v9 }
 0x139   :  { %1106 = vmatprep.subr.bf16.mxu0 %v1229_v21  ;;  %v930_v60 = vrot.slane %v925_v49, %v929_v59 }
 0x13a   :  { %v1199_v46 = vpop.eup %1198 }
 0x13b   :  { %v847_v51 = vmul.f32 %v1199_v46, %v735_v5 }
 0x13c   :  { %v1201_v52 = vpop.eup %1200 }
 0x13d   :  { %v1203_v53 = vpop.eup %1202  ;;  %v1107_v58 = vpack.c.bf16 %v847_v51, %v846_v50  ;;  %v848_v54 = vmul.f32 %v1201_v52, %v736_v22 }
 0x13e   :  { %v849_v56 = vmul.f32 %v1203_v53, %v737_v23 }
 0x140   :  { %1108 = vmatpush3.bf16.xpose.msra.mxu0 %v1107_v58  ;;  %v1110_v30 = vpack.c.bf16 %v849_v56, %v848_v54 }
 0x141   :  { %1109 = vmatprep.subr.bf16.mxu0 %v1229_v21 }
 0x148   :  { %1111 = vmatpush3.bf16.xpose.msra.mxu0 %v1110_v30 }
 0x14f   :  { %1086 = vmatmul.mubr.f32.vlgmr.msra.gmra.mrb[32].mxu0 %v850_v18 }
 0x222   :  { %v917_v61 = vpop.f32.mrb[32].mxu0 }
 0x223   :  { %v931_v6 = vadd.f32 %v930_v60, %v917_v61  ;;  %v1087_v37 = vpop.f32.mrb[33].mxu0 }
 0x225   :  { %932 = vst [vmem:[#allocation4] sm:$0x1] %v931_v6 }
 0x226   :  { %1215 = shalt.err (!%p1212_p4)
}
 0x227   :  { %s1216_s16 = scalar_lea.hbm %s1516_s6, 16 }
 0x228   :  { %p1217_p5 = scmp.ne.s32.totalorder %s1516_s6, %s1216_s16  ;;  %p1220_p6 = scmp.lt.u32.totalorder %s1216_s16, %s1516_s6 }
 0x22a   :  { %p1222_p7 = pnand %p1220_p6, %p1217_p5 }
 0x22c   :  { %1225 = shalt.err (!%p1222_p7)
}
 0x22d   :  { %942 = dma.vmem_to_hbm [thread:$0]  %s940_s12, 16, %s1516_s6, [#allocation5]  }
 0x22e   :  { %1226 = dma.done.wait [#allocation5], 16  }
 0x22f   :  { %1227 = vsyncadd [#allocation5], 4294967280 }
 0x230   :  { %946 = vsyncpa [#allocation5], 1 }

</bundles_post_ra>
